<compile_context>
chip_gen: v7x
topology: tpu7x:2x2x1
jax: 0.10.0
libtpu: 0.0.40
codegen_flags: <defaults>
</compile_context>

<pallas_src>
import jax
import jax.numpy as jnp
from jax.experimental import pallas as pl
from jax.experimental.pallas import tpu as pltpu


def _coattn_kernel(audio_ref, text_ref, video_ref,
                   wpa_ref, wpt_ref, wpv_ref, bp_ref,
                   wgt_ref, bg_ref,
                   wf_ref, bf_ref,
                   out_ref):
    tb, d = audio_ref.shape
    t = video_ref.shape[0] // tb

    audio = audio_ref[...]                                  # [TB, D]
    text = text_ref[...]                                    # [TB, D]
    video = video_ref[...]                                  # [TB*T, D]

    # video.mean(dim=1): accumulate in f32. D stays the lane dim, so the
    # reshape only regroups sublanes (no lane-crossing relayout).
    vmean_f32 = jnp.mean(
        video.astype(jnp.float32).reshape(tb, t, d), axis=1)   # [TB, D] f32
    vmean = vmean_f32.astype(audio.dtype)

    # concatenated = cat([audio, text, vmean]) @ W_proj + b_proj, expressed as
    # a sum of three matmuls over the split weight (f32 MXU accumulation).
    proj = (jnp.dot(audio, wpa_ref[...], preferred_element_type=jnp.float32)
            + jnp.dot(text, wpt_ref[...], preferred_element_type=jnp.float32)
            + jnp.dot(vmean, wpv_ref[...], preferred_element_type=jnp.float32)
            + bp_ref[...])                                      # [TB, H] f32

    # fusion_weights = sigmoid(proj @ W_gate + b_gate). N=3 would waste a full
    # MXU pass, so use three VPU/XLU lane reductions instead (f32 throughout).
    wgt = wgt_ref[...]                                          # [3, H] f32
    bg = bg_ref[...]                                            # [1, 3] f32
    g0 = jax.nn.sigmoid(jnp.sum(proj * wgt[0:1, :], axis=-1, keepdims=True)
                        + bg[:, 0:1])                           # [TB, 1]
    g1 = jax.nn.sigmoid(jnp.sum(proj * wgt[1:2, :], axis=-1, keepdims=True)
                        + bg[:, 1:2])
    g2 = jax.nn.sigmoid(jnp.sum(proj * wgt[2:3, :], axis=-1, keepdims=True)
                        + bg[:, 2:3])

    # combined = w0*audio + w1*text + w2*vmean (elementwise math kept in f32:
    # v5e's VPU has no bf16).
    combined = (g0 * audio.astype(jnp.float32)
                + g1 * text.astype(jnp.float32)
                + g2 * vmean_f32)                               # [TB, D] f32

    # logits = combined @ W_fc + b_fc
    out = jnp.dot(combined.astype(wf_ref.dtype), wf_ref[...],
                  preferred_element_type=jnp.float32) + bf_ref[...]
    out_ref[...] = out.astype(out_ref.dtype)


def prepare_params(params, compute_dtype=jnp.bfloat16):
    """One-time parameter prep (split / transpose / cast). Do NOT call per step."""
    D = params["w_fc"].shape[0]
    w_proj = params["w_proj"]                    # [3D, H]
    return {
        "wpa": w_proj[:D].astype(compute_dtype),
        "wpt": w_proj[D:2 * D].astype(compute_dtype),
        "wpv": w_proj[2 * D:3 * D].astype(compute_dtype),
        "b_proj": params["b_proj"].astype(jnp.float32)[None, :],     # [1, H]
        "w_gate_t": params["w_gate"].T.astype(jnp.float32),          # [3, H]
        "b_gate": params["b_gate"].astype(jnp.float32)[None, :],     # [1, 3]
        "w_fc": params["w_fc"].astype(compute_dtype),                # [D, C]
        "b_fc": params["b_fc"].astype(jnp.float32)[None, :],         # [1, C]
    }


def coattention_fusion_gated(audio, text, video, prepped,
                             compute_dtype=jnp.bfloat16):
    """audio/text: [B, D]; video: [B, T, D]; prepped = prepare_params(...)."""
    B, D = audio.shape
    T = video.shape[1]
    C = prepped["w_fc"].shape[1]

    # Batch tile: fill the 256-row MXU (v6e/v7x) when B allows; bounded well
    # under v7x's 64 MiB VMEM for bf16 activations at moderate T.
    # TODO(synk): for very large T, add an inner 'arbitrary' T axis that
    # streams video chunks into a [TB, D] f32 accumulator.
    TB = 256 if B >= 256 else B
    grid = (pl.cdiv(B, TB),)

    audio_c = audio.astype(compute_dtype)
    text_c = text.astype(compute_dtype)
    # Flatten video to [B*T, D] so the block's last two dims stay (8,128)
    # aligned (avoids T<8 sublane padding of a (TB, T, D) block).
    video2d = video.reshape(B * T, D).astype(compute_dtype)

    def act_spec(rows):
        return pl.BlockSpec((rows, D), lambda i: (i, 0))

    def resident(arr):
        # Constant index map -> weight stays VMEM-resident across batch tiles.
        return pl.BlockSpec(arr.shape, lambda i: (0, 0))

    in_specs = [
        act_spec(TB),                                   # audio
        act_spec(TB),                                   # text
        pl.BlockSpec((TB * T, D), lambda i: (i, 0)),    # video (flattened)
        resident(prepped["wpa"]),
        resident(prepped["wpt"]),
        resident(prepped["wpv"]),
        resident(prepped["b_proj"]),
        resident(prepped["w_gate_t"]),
        resident(prepped["b_gate"]),
        resident(prepped["w_fc"]),
        resident(prepped["b_fc"]),
    ]
    out_spec = pl.BlockSpec((TB, C), lambda i: (i, 0))

    return pl.pallas_call(
        _coattn_kernel,
        out_shape=jax.ShapeDtypeStruct((B, C), jnp.float32),
        grid=grid,
        in_specs=in_specs,
        out_specs=out_spec,
        compiler_params=pltpu.CompilerParams(
            dimension_semantics=("parallel",),          # megacore on v7x
            vmem_limit_bytes=32 * 1024 * 1024,          # fits all generations
        ),
    )(audio_c, text_c, video2d,
      prepped["wpa"], prepped["wpt"], prepped["wpv"], prepped["b_proj"],
      prepped["w_gate_t"], prepped["b_gate"],
      prepped["w_fc"], prepped["b_fc"])


def _reference(audio, text, video, params):
    """Pure-JAX f32 reference mirroring the gated-fusion forward."""
    vmean = jnp.mean(video, axis=1)
    concat = jnp.concatenate([audio, text, vmean], axis=-1)
    proj = concat @ params["w_proj"] + params["b_proj"]
    gate = jax.nn.sigmoid(proj @ params["w_gate"] + params["b_gate"])
    combined = (gate[:, 0:1] * audio + gate[:, 1:2] * text + gate[:, 2:3] * vmean)
    return combined @ params["w_fc"] + params["b_fc"]


if __name__ == "__main__":
    # Small but shape-faithful configuration (feature dim 768, hidden 128).
    B, T, D = 8, 4, 768
    hidden_dim = 128
    num_classes = 8

    key = jax.random.PRNGKey(0)
    keys = jax.random.split(key, 10)

    audio = jax.random.normal(keys[0], (B, D), jnp.float32)
    text = jax.random.normal(keys[1], (B, D), jnp.float32)
    video = jax.random.normal(keys[2], (B, T, D), jnp.float32)

    scale = 0.02
    params = {
        "w_proj": scale * jax.random.normal(keys[3], (3 * D, hidden_dim), jnp.float32),
        "b_proj": scale * jax.random.normal(keys[4], (hidden_dim,), jnp.float32),
        "w_gate": scale * jax.random.normal(keys[5], (hidden_dim, 3), jnp.float32),
        "b_gate": scale * jax.random.normal(keys[6], (3,), jnp.float32),
        "w_fc": scale * jax.random.normal(keys[7], (D, num_classes), jnp.float32),
        "b_fc": scale * jax.random.normal(keys[8], (num_classes,), jnp.float32),
    }

    ref = _reference(audio, text, video, params)

    # f32 path: exact-math check of the kernel structure.
    prepped_f32 = prepare_params(params, jnp.float32)
    out_f32 = jax.block_until_ready(
        coattention_fusion_gated(audio, text, video, prepped_f32,
                                 compute_dtype=jnp.float32))
    assert out_f32.shape == (B, num_classes)
    assert jnp.allclose(out_f32, ref, atol=1e-4, rtol=1e-4), "f32 mismatch vs reference"

    # bf16 HBM path (the optimized configuration): looser tolerance vs f32 ref.
    prepped_bf16 = prepare_params(params, jnp.bfloat16)
    out_bf16 = jax.block_until_ready(
        coattention_fusion_gated(audio, text, video, prepped_bf16,
                                 compute_dtype=jnp.bfloat16))
    assert out_bf16.shape == (B, num_classes)
    assert jnp.allclose(out_bf16, ref, atol=5e-2, rtol=5e-2), "bf16 mismatch vs reference"

    print("KERNEL_OK")
</pallas_src>

<mosaic_0001>
module attributes {stable_mosaic.version = 11 : i64} {
  func.func @_coattn_kernel(%arg0: i32, %arg1: memref<8x768xf32, #tpu.memory_space<vmem>>, %arg2: memref<8x768xf32, #tpu.memory_space<vmem>>, %arg3: memref<32x768xf32, #tpu.memory_space<vmem>>, %arg4: memref<768x128xf32, #tpu.memory_space<vmem>>, %arg5: memref<768x128xf32, #tpu.memory_space<vmem>>, %arg6: memref<768x128xf32, #tpu.memory_space<vmem>>, %arg7: memref<1x128xf32, #tpu.memory_space<vmem>>, %arg8: memref<3x128xf32, #tpu.memory_space<vmem>>, %arg9: memref<1x3xf32, #tpu.memory_space<vmem>>, %arg10: memref<768x8xf32, #tpu.memory_space<vmem>>, %arg11: memref<1x8xf32, #tpu.memory_space<vmem>>, %arg12: memref<8x8xf32, #tpu.memory_space<vmem>>) attributes {dimension_semantics = [#tpu.dimension_semantics<parallel>], iteration_bounds = array<i64: 1>, scalar_prefetch = 0 : i64, scratch_operands = 0 : i64, tpu.core_type = #tpu.core_type<tc>, window_params = [{transform_indices = @transform_0, window_bounds = array<i64: 8, 768>}, {transform_indices = @transform_1, window_bounds = array<i64: 8, 768>}, {transform_indices = @transform_2, window_bounds = array<i64: 32, 768>}, {pipeline_mode = #tpu.pipeline_mode<synchronous>, transform_indices = @transform_3, window_bounds = array<i64: 768, 128>}, {pipeline_mode = #tpu.pipeline_mode<synchronous>, transform_indices = @transform_4, window_bounds = array<i64: 768, 128>}, {pipeline_mode = #tpu.pipeline_mode<synchronous>, transform_indices = @transform_5, window_bounds = array<i64: 768, 128>}, {pipeline_mode = #tpu.pipeline_mode<synchronous>, transform_indices = @transform_6, window_bounds = array<i64: 1, 128>}, {pipeline_mode = #tpu.pipeline_mode<synchronous>, transform_indices = @transform_7, window_bounds = array<i64: 3, 128>}, {pipeline_mode = #tpu.pipeline_mode<synchronous>, transform_indices = @transform_8, window_bounds = array<i64: 1, 3>}, {pipeline_mode = #tpu.pipeline_mode<synchronous>, transform_indices = @transform_9, window_bounds = array<i64: 768, 8>}, {pipeline_mode = #tpu.pipeline_mode<synchronous>, transform_indices = @transform_10, window_bounds = array<i64: 1, 8>}, {transform_indices = @transform_11, window_bounds = array<i64: 8, 8>}]} {
    %c0 = arith.constant 0 : index
    %c0_0 = arith.constant 0 : index
    %0 = vector.load %arg1[%c0, %c0_0] : memref<8x768xf32, #tpu.memory_space<vmem>>, vector<8x768xf32>
    %c0_1 = arith.constant 0 : index
    %c0_2 = arith.constant 0 : index
    %1 = vector.load %arg2[%c0_1, %c0_2] : memref<8x768xf32, #tpu.memory_space<vmem>>, vector<8x768xf32>
    %c0_3 = arith.constant 0 : index
    %c0_4 = arith.constant 0 : index
    %2 = vector.load %arg3[%c0_3, %c0_4] : memref<32x768xf32, #tpu.memory_space<vmem>>, vector<32x768xf32>
    %3 = vector.shape_cast %2 : vector<32x768xf32> to vector<8x4x768xf32>
    %cst = arith.constant dense<0.000000e+00> : vector<8x768xf32>
    %4 = vector.multi_reduction <add>, %3, %cst [1] : vector<8x4x768xf32> to vector<8x768xf32>
    %cst_5 = arith.constant 4.000000e+00 : f32
    %5 = vector.broadcast %cst_5 : f32 to vector<8x768xf32>
    %6 = arith.divf %4, %5 : vector<8x768xf32>
    %c0_6 = arith.constant 0 : index
    %c0_7 = arith.constant 0 : index
    %7 = vector.load %arg4[%c0_6, %c0_7] : memref<768x128xf32, #tpu.memory_space<vmem>>, vector<768x128xf32>
    %cst_8 = arith.constant dense<0.000000e+00> : vector<8x128xf32>
    %8 = tpu.matmul %0, %7, %cst_8 {dimension_numbers = #tpu.dot_dimension_numbers<[1], [0], [0], [1], [0, 0, 1, 1], [], []>} : vector<8x768xf32>, vector<768x128xf32>, vector<8x128xf32> -> vector<8x128xf32>
    %c0_9 = arith.constant 0 : index
    %c0_10 = arith.constant 0 : index
    %9 = vector.load %arg5[%c0_9, %c0_10] : memref<768x128xf32, #tpu.memory_space<vmem>>, vector<768x128xf32>
    %cst_11 = arith.constant dense<0.000000e+00> : vector<8x128xf32>
    %10 = tpu.matmul %1, %9, %cst_11 {dimension_numbers = #tpu.dot_dimension_numbers<[1], [0], [0], [1], [0, 0, 1, 1], [], []>} : vector<8x768xf32>, vector<768x128xf32>, vector<8x128xf32> -> vector<8x128xf32>
    %11 = arith.addf %8, %10 : vector<8x128xf32>
    %c0_12 = arith.constant 0 : index
    %c0_13 = arith.constant 0 : index
    %12 = vector.load %arg6[%c0_12, %c0_13] : memref<768x128xf32, #tpu.memory_space<vmem>>, vector<768x128xf32>
    %cst_14 = arith.constant dense<0.000000e+00> : vector<8x128xf32>
    %13 = tpu.matmul %6, %12, %cst_14 {dimension_numbers = #tpu.dot_dimension_numbers<[1], [0], [0], [1], [0, 0, 1, 1], [], []>} : vector<8x768xf32>, vector<768x128xf32>, vector<8x128xf32> -> vector<8x128xf32>
    %14 = arith.addf %11, %13 : vector<8x128xf32>
    %c0_15 = arith.constant 0 : index
    %c0_16 = arith.constant 0 : index
    %15 = vector.load %arg7[%c0_15, %c0_16] : memref<1x128xf32, #tpu.memory_space<vmem>>, vector<1x128xf32>
    %16 = vector.broadcast %15 : vector<1x128xf32> to vector<8x128xf32>
    %17 = arith.addf %14, %16 : vector<8x128xf32>
    %c0_17 = arith.constant 0 : index
    %c0_18 = arith.constant 0 : index
    %18 = vector.load %arg8[%c0_17, %c0_18] : memref<3x128xf32, #tpu.memory_space<vmem>>, vector<3x128xf32>
    %c0_19 = arith.constant 0 : index
    %c0_20 = arith.constant 0 : index
    %19 = vector.load %arg9[%c0_19, %c0_20] : memref<1x3xf32, #tpu.memory_space<vmem>>, vector<1x3xf32>
    %20 = vector.extract_strided_slice %18 {offsets = [0, 0], sizes = [1, 128], strides = [1, 1]} : vector<3x128xf32> to vector<1x128xf32>
    %21 = vector.broadcast %20 : vector<1x128xf32> to vector<8x128xf32>
    %22 = arith.mulf %17, %21 : vector<8x128xf32>
    %cst_21 = arith.constant dense<0.000000e+00> : vector<8xf32>
    %23 = vector.multi_reduction <add>, %22, %cst_21 [1] : vector<8x128xf32> to vector<8xf32>
    %24 = vector.shape_cast %23 : vector<8xf32> to vector<8x1xf32>
    %25 = vector.extract_strided_slice %19 {offsets = [0, 0], sizes = [1, 1], strides = [1, 1]} : vector<1x3xf32> to vector<1x1xf32>
    %26 = vector.broadcast %25 : vector<1x1xf32> to vector<8x1xf32>
    %27 = arith.addf %24, %26 : vector<8x1xf32>
    %28 = arith.negf %27 : vector<8x1xf32>
    %29 = math.exp %28 : vector<8x1xf32>
    %cst_22 = arith.constant 1.000000e+00 : f32
    %30 = vector.broadcast %cst_22 : f32 to vector<8x1xf32>
    %31 = arith.addf %30, %29 : vector<8x1xf32>
    %32 = arith.divf %30, %31 : vector<8x1xf32>
    %33 = vector.extract_strided_slice %18 {offsets = [1, 0], sizes = [1, 128], strides = [1, 1]} : vector<3x128xf32> to vector<1x128xf32>
    %34 = vector.broadcast %33 : vector<1x128xf32> to vector<8x128xf32>
    %35 = arith.mulf %17, %34 : vector<8x128xf32>
    %cst_23 = arith.constant dense<0.000000e+00> : vector<8xf32>
    %36 = vector.multi_reduction <add>, %35, %cst_23 [1] : vector<8x128xf32> to vector<8xf32>
    %37 = vector.shape_cast %36 : vector<8xf32> to vector<8x1xf32>
    %38 = vector.extract_strided_slice %19 {offsets = [0, 1], sizes = [1, 1], strides = [1, 1]} : vector<1x3xf32> to vector<1x1xf32>
    %39 = vector.broadcast %38 : vector<1x1xf32> to vector<8x1xf32>
    %40 = arith.addf %37, %39 : vector<8x1xf32>
    %41 = arith.negf %40 : vector<8x1xf32>
    %42 = math.exp %41 : vector<8x1xf32>
    %cst_24 = arith.constant 1.000000e+00 : f32
    %43 = vector.broadcast %cst_24 : f32 to vector<8x1xf32>
    %44 = arith.addf %43, %42 : vector<8x1xf32>
    %45 = arith.divf %43, %44 : vector<8x1xf32>
    %46 = vector.extract_strided_slice %18 {offsets = [2, 0], sizes = [1, 128], strides = [1, 1]} : vector<3x128xf32> to vector<1x128xf32>
    %47 = vector.broadcast %46 : vector<1x128xf32> to vector<8x128xf32>
    %48 = arith.mulf %17, %47 : vector<8x128xf32>
    %cst_25 = arith.constant dense<0.000000e+00> : vector<8xf32>
    %49 = vector.multi_reduction <add>, %48, %cst_25 [1] : vector<8x128xf32> to vector<8xf32>
    %50 = vector.shape_cast %49 : vector<8xf32> to vector<8x1xf32>
    %51 = vector.extract_strided_slice %19 {offsets = [0, 2], sizes = [1, 1], strides = [1, 1]} : vector<1x3xf32> to vector<1x1xf32>
    %52 = vector.broadcast %51 : vector<1x1xf32> to vector<8x1xf32>
    %53 = arith.addf %50, %52 : vector<8x1xf32>
    %54 = arith.negf %53 : vector<8x1xf32>
    %55 = math.exp %54 : vector<8x1xf32>
    %cst_26 = arith.constant 1.000000e+00 : f32
    %56 = vector.broadcast %cst_26 : f32 to vector<8x1xf32>
    %57 = arith.addf %56, %55 : vector<8x1xf32>
    %58 = arith.divf %56, %57 : vector<8x1xf32>
    %59 = vector.broadcast %32 : vector<8x1xf32> to vector<8x768xf32>
    %60 = arith.mulf %59, %0 : vector<8x768xf32>
    %61 = vector.broadcast %45 : vector<8x1xf32> to vector<8x768xf32>
    %62 = arith.mulf %61, %1 : vector<8x768xf32>
    %63 = arith.addf %60, %62 : vector<8x768xf32>
    %64 = vector.broadcast %58 : vector<8x1xf32> to vector<8x768xf32>
    %65 = arith.mulf %64, %6 : vector<8x768xf32>
    %66 = arith.addf %63, %65 : vector<8x768xf32>
    %c0_27 = arith.constant 0 : index
    %c0_28 = arith.constant 0 : index
    %67 = vector.load %arg10[%c0_27, %c0_28] : memref<768x8xf32, #tpu.memory_space<vmem>>, vector<768x8xf32>
    %cst_29 = arith.constant dense<0.000000e+00> : vector<8x8xf32>
    %68 = tpu.matmul %66, %67, %cst_29 {dimension_numbers = #tpu.dot_dimension_numbers<[1], [0], [0], [1], [0, 0, 1, 1], [], []>} : vector<8x768xf32>, vector<768x8xf32>, vector<8x8xf32> -> vector<8x8xf32>
    %c0_30 = arith.constant 0 : index
    %c0_31 = arith.constant 0 : index
    %69 = vector.load %arg11[%c0_30, %c0_31] : memref<1x8xf32, #tpu.memory_space<vmem>>, vector<1x8xf32>
    %70 = vector.broadcast %69 : vector<1x8xf32> to vector<8x8xf32>
    %71 = arith.addf %68, %70 : vector<8x8xf32>
    %c0_32 = arith.constant 0 : index
    %c0_33 = arith.constant 0 : index
    %72 = vector.load %arg12[%c0_32, %c0_33] : memref<8x8xf32, #tpu.memory_space<vmem>>, vector<8x8xf32>
    tpu.vector_store %arg12[%c0_32, %c0_33], %71 {strides = array<i32>} : memref<8x8xf32, #tpu.memory_space<vmem>>, vector<8x8xf32>,
    return
  }
  func.func @transform_0(%arg0: i32) -> (i32, i32) {
    %c0_i32 = arith.constant 0 : i32
    %c0_i32_0 = arith.constant 0 : i32
    return %arg0, %c0_i32 : i32, i32
  }
  func.func @transform_1(%arg0: i32) -> (i32, i32) {
    %c0_i32 = arith.constant 0 : i32
    %c0_i32_0 = arith.constant 0 : i32
    return %arg0, %c0_i32 : i32, i32
  }
  func.func @transform_2(%arg0: i32) -> (i32, i32) {
    %c0_i32 = arith.constant 0 : i32
    %c0_i32_0 = arith.constant 0 : i32
    return %arg0, %c0_i32 : i32, i32
  }
  func.func @transform_3(%arg0: i32) -> (i32, i32) {
    %c0_i32 = arith.constant 0 : i32
    %c0_i32_0 = arith.constant 0 : i32
    %c0_i32_1 = arith.constant 0 : i32
    return %c0_i32, %c0_i32_0 : i32, i32
  }
  func.func @transform_4(%arg0: i32) -> (i32, i32) {
    %c0_i32 = arith.constant 0 : i32
    %c0_i32_0 = arith.constant 0 : i32
    %c0_i32_1 = arith.constant 0 : i32
    return %c0_i32, %c0_i32_0 : i32, i32
  }
  func.func @transform_5(%arg0: i32) -> (i32, i32) {
    %c0_i32 = arith.constant 0 : i32
    %c0_i32_0 = arith.constant 0 : i32
    %c0_i32_1 = arith.constant 0 : i32
    return %c0_i32, %c0_i32_0 : i32, i32
  }
  func.func @transform_6(%arg0: i32) -> (i32, i32) {
    %c0_i32 = arith.constant 0 : i32
    %c0_i32_0 = arith.constant 0 : i32
    %c0_i32_1 = arith.constant 0 : i32
    return %c0_i32, %c0_i32_0 : i32, i32
  }
  func.func @transform_7(%arg0: i32) -> (i32, i32) {
    %c0_i32 = arith.constant 0 : i32
    %c0_i32_0 = arith.constant 0 : i32
    %c0_i32_1 = arith.constant 0 : i32
    return %c0_i32, %c0_i32_0 : i32, i32
  }
  func.func @transform_8(%arg0: i32) -> (i32, i32) {
    %c0_i32 = arith.constant 0 : i32
    %c0_i32_0 = arith.constant 0 : i32
    %c0_i32_1 = arith.constant 0 : i32
    return %c0_i32, %c0_i32_0 : i32, i32
  }
  func.func @transform_9(%arg0: i32) -> (i32, i32) {
    %c0_i32 = arith.constant 0 : i32
    %c0_i32_0 = arith.constant 0 : i32
    %c0_i32_1 = arith.constant 0 : i32
    return %c0_i32, %c0_i32_0 : i32, i32
  }
  func.func @transform_10(%arg0: i32) -> (i32, i32) {
    %c0_i32 = arith.constant 0 : i32
    %c0_i32_0 = arith.constant 0 : i32
    %c0_i32_1 = arith.constant 0 : i32
    return %c0_i32, %c0_i32_0 : i32, i32
  }
  func.func @transform_11(%arg0: i32) -> (i32, i32) {
    %c0_i32 = arith.constant 0 : i32
    %c0_i32_0 = arith.constant 0 : i32
    return %arg0, %c0_i32 : i32, i32
  }
}

</mosaic_0001>

<bundles_post_ra>
// kernel: tpu_custom_call.1
= control target key start
LH: loop header
LB: loop body
LE: loop exit
PB: predicated region body
PF: predicated region fallthrough
CT: control target
= control target key end

     0   :  { %16 = vsyncpa [#allocation3], 0  ;;  %s4664_s0 = inlined_call_operand.vmem [shape: f32[8,768], index: 0, kind: input, shape index: {}]   ;;  %s4665_s1 = inlined_call_operand.hbm [shape: f32[8,768], index: 1, kind: input, shape index: {}]   ;;  %s4666_s2 = inlined_call_operand.hbm [shape: f32[32,768], index: 2, kind: input, shape index: {}]   ;;  %s4667_s3 = inlined_call_operand.vmem [shape: f32[768,128], index: 3, kind: input, shape index: {}]   ;;  %s4668_s4 = inlined_call_operand.hbm [shape: f32[768,128], index: 4, kind: input, shape index: {}]   ;;  %s4669_s5 = inlined_call_operand.hbm [shape: f32[768,128], index: 5, kind: input, shape index: {}]   ;;  %s4670_s6 = inlined_call_operand.vmem [shape: f32[1,128], index: 6, kind: input, shape index: {}]   ;;  %s4671_s7 = inlined_call_operand.vmem [shape: f32[3,128], index: 7, kind: input, shape index: {}]   ;;  %s4672_s8 = inlined_call_operand.vmem [shape: f32[1,3], index: 8, kind: input, shape index: {}]   ;;  %s4673_s9 = inlined_call_operand.vmem [shape: f32[768,8], index: 9, kind: input, shape index: {}]   ;;  %s4674_s10 = inlined_call_operand.vmem [shape: f32[1,8], index: 10, kind: input, shape index: {}]   ;;  %s4675_s11 = inlined_call_operand.hbm [shape: f32[8,8], index: 11, kind: output, shape index: {}]  }
   0x1   :  { %17 = vsyncpa [#allocation6], 0 }
   0x2   :  { %18 = vsyncpa [#allocation9], 0 }
   0x3   :  { %19 = vsyncpa [#allocation4], 0  ;;  %s3131_s17 = smov [#allocation5]   ;;  %s3013_s21 = scalar_lea.hbm %s4666_s2, 3072 }
   0x4   :  { %s37_s18 = sshll.u32 %s3131_s17, 4  ;;  %p3014_p0 = scmp.ne.s32.totalorder %s4666_s2, %s3013_s21  ;;  %s38_s18 = int_to_ptr.vmem [resolvable:$true] %s37_s18 }
   0x5   :  { %p3017_p1 = scmp.lt.u32.totalorder %s3013_s21, %s4666_s2 }
   0x7   :  { %p3019_p2 = pnand %p3017_p1, %p3014_p0 }
   0x9   :  { %3022 = shalt.err (!%p3019_p2)
}
   0xa   :  { %s3023_s26 = scalar_lea.vmem %s38_s18, 3072  ;;  %p3028_p4 = scmp.lt.s32.totalorder %s38_s18, %s38_s18 }
   0xb   :  { %p3024_p3 = scmp.ne.s32.totalorder %s38_s18, %s3023_s26  ;;  %p3029_p5 = scmp.lt.s32.totalorder %s3023_s26, %s3023_s26 }
   0xd   :  { %p3030_p6 = por %p3029_p5, %p3028_p4 }
   0xf   :  { %p3031_p7 = pnand %p3030_p6, %p3024_p3 }
  0x11   :  { %3034 = shalt.err (!%p3031_p7)
}
  0x12   :  { %s3132_s27 = smov 768   ;;  %s3133_s28 = smov 48  }
  0x13   :  { %43 = dma.hbm_to_vmem [thread:$0]  %s4666_s2, 3072, %s38_s18, [#allocation6], %s3132_s27, %s3132_s27, %s3133_s28  }
  0x14   :  { %s3134_s12 = smov [#allocation2]   ;;  %s3135_s14 = smov [#allocation7]  }
  0x15   :  { %s28_s13 = sshll.u32 %s3134_s12, 4  ;;  %s51_s15 = sshll.u32 %s3135_s14, 4  ;;  %s29_s13 = int_to_ptr.vmem [resolvable:$true] %s28_s13  ;;  %s52_s15 = int_to_ptr.vmem [resolvable:$true] %s51_s15 }
  0x16   :  { %s3035_s19 = scalar_lea.hbm %s4665_s1, 768 }
  0x17   :  { %p3036_p8 = scmp.ne.s32.totalorder %s4665_s1, %s3035_s19  ;;  %p3039_p9 = scmp.lt.u32.totalorder %s3035_s19, %s4665_s1 }
  0x19   :  { %p3041_p10 = pnand %p3039_p9, %p3036_p8 }
  0x1b   :  { %3044 = shalt.err (!%p3041_p10)
}
  0x1c   :  { %s3045_s2 = scalar_lea.vmem %s29_s13, 768  ;;  %p3050_p12 = scmp.lt.s32.totalorder %s29_s13, %s29_s13 }
  0x1d   :  { %p3046_p11 = scmp.ne.s32.totalorder %s29_s13, %s3045_s2  ;;  %p3051_p13 = scmp.lt.s32.totalorder %s3045_s2, %s3045_s2 }
  0x1f   :  { %p3052_p0 = por %p3051_p13, %p3050_p12 }
  0x21   :  { %p3053_p1 = pnand %p3052_p0, %p3046_p11 }
  0x23   :  { %3056 = shalt.err (!%p3053_p1)
}
  0x24   :  { %31 = dma.hbm_to_vmem [thread:$0]  %s4665_s1, 768, %s29_s13, [#allocation3]  }
  0x25   :  { %s3057_s27 = scalar_lea.hbm %s4668_s4, 12288 }
  0x26   :  { %p3058_p2 = scmp.ne.s32.totalorder %s4668_s4, %s3057_s27  ;;  %p3061_p3 = scmp.lt.u32.totalorder %s3057_s27, %s4668_s4 }
  0x28   :  { %p3063_p4 = pnand %p3061_p3, %p3058_p2 }
  0x2a   :  { %3066 = shalt.err (!%p3063_p4)
}
  0x2b   :  { %s3067_s14 = scalar_lea.vmem %s52_s15, 12288  ;;  %p3072_p6 = scmp.lt.s32.totalorder %s52_s15, %s52_s15 }
  0x2c   :  { %p3068_p5 = scmp.ne.s32.totalorder %s52_s15, %s3067_s14  ;;  %p3073_p7 = scmp.lt.s32.totalorder %s3067_s14, %s3067_s14 }
  0x2e   :  { %p3074_p8 = por %p3073_p7, %p3072_p6 }
  0x30   :  { %p3075_p9 = pnand %p3074_p8, %p3068_p5 }
  0x32   :  { %3078 = shalt.err (!%p3075_p9)
}
  0x33   :  { %s3136_s1 = smov 128   ;;  %s3137_s13 = smov 8  }
  0x34   :  { %57 = dma.hbm_to_vmem [thread:$0]  %s4668_s4, 12288, %s52_s15, [#allocation6], %s3136_s1, %s3136_s1, %s3137_s13  }
  0x35   :  { %s3138_s19 = smov [#allocation8]   ;;  %s3079_s23 = scalar_lea.hbm %s4669_s5, 12288 }
  0x36   :  { %s63_s20 = sshll.u32 %s3138_s19, 4  ;;  %p3080_p10 = scmp.ne.s32.totalorder %s4669_s5, %s3079_s23  ;;  %s64_s20 = int_to_ptr.vmem [resolvable:$true] %s63_s20 }
  0x37   :  { %p3083_p11 = scmp.lt.u32.totalorder %s3079_s23, %s4669_s5 }
  0x39   :  { %p3085_p12 = pnand %p3083_p11, %p3080_p10 }
  0x3b   :  { %3088 = shalt.err (!%p3085_p12)
}
  0x3c   :  { %s3089_s26 = scalar_lea.vmem %s64_s20, 12288  ;;  %p3094_p0 = scmp.lt.s32.totalorder %s64_s20, %s64_s20 }
  0x3d   :  { %p3090_p13 = scmp.ne.s32.totalorder %s64_s20, %s3089_s26  ;;  %p3095_p1 = scmp.lt.s32.totalorder %s3089_s26, %s3089_s26 }
  0x3f   :  { %p3096_p2 = por %p3095_p1, %p3094_p0 }
  0x41   :  { %p3097_p3 = pnand %p3096_p2, %p3090_p13 }
  0x43   :  { %3100 = shalt.err (!%p3097_p3)
}
  0x44   :  { %69 = dma.hbm_to_vmem [thread:$0]  %s4669_s5, 12288, %s64_s20, [#allocation9], %s3136_s1, %s3136_s1, %s3137_s13  }
  0x45   :  { %3123 = dma.done.wait [#allocation3], 768  }
  0x46   :  { %3124 = vsyncadd [#allocation3], 4294966528 }
  0x47   :  { %3125 = dma.done.wait [#allocation6], 15360  }
  0x48   :  { %3126 = vsyncadd [#allocation6], 4294951936 }
  0x49   :  { %3127 = dma.done.wait [#allocation9], 12288  }
  0x4a   :  { %3128 = vsyncadd [#allocation9], 4294955008  ;;  %v746_v0 = vld [vmem:[#allocation7 + $0x80] sm:$0xff]  ;;  %v747_v1 = vld [vmem:[#allocation7 + $0x88] sm:$0xff]  ;;  %vm248_vm0 = vcmask 1043456   ;;  %vm1390_vm1 = vcmask 1041409  }
  0x4b   :  { %v778_v2 = vld [vmem:[#allocation7 + $0x180] sm:$0xff]  ;;  %v2541_v3 = vpack.c.bf16 %v747_v1, %v746_v0  ;;  %v779_v4 = vld [vmem:[#allocation7 + $0x188] sm:$0xff]  ;;  %v748_v11 = vld [vmem:[#allocation7 + $0x90] sm:$0xff]  ;;  %vm1392_vm2 = vcmask 1042434   ;;  %vm1394_vm3 = vcmask 1043459   ;;  %vm1396_vm4 = vcmask 1044484  }
  0x4c   :  { %v730_v5 = vld [vmem:[#allocation7] sm:$0xff]  ;;  %v731_v6 = vld [vmem:[#allocation7 + $0x8] sm:$0xff]  ;;  %v2573_v7 = vpack.c.bf16 %v779_v4, %v778_v2  ;;  %v749_v13 = vld [vmem:[#allocation7 + $0x98] sm:$0xff]  ;;  %vm1398_vm5 = vcmask 1045509   ;;  %vm1400_vm6 = vcmask 1046534   ;;  %vm1402_vm7 = vcmask 1047559  }
  0x4d   :  { %v2543_v8 = vpack.c.bf16 %v731_v6, %v730_v5  ;;  %v762_v9 = vld [vmem:[#allocation7 + $0x100] sm:$0xff]  ;;  %v763_v10 = vld [vmem:[#allocation7 + $0x108] sm:$0xff]  ;;  %2542 = vmatprep.subr.bf16.mxu0 %v2541_v3  ;;  %v780_v14 = vld [vmem:[#allocation7 + $0x190] sm:$0xff]  ;;  %v2545_v16 = vpack.c.bf16 %v749_v13, %v748_v11  ;;  %vm2072_vm8 = vcmask 64512  }
  0x4e   :  { %v2575_v12 = vpack.c.bf16 %v763_v10, %v762_v9  ;;  %v781_v15 = vld [vmem:[#allocation7 + $0x198] sm:$0xff]  ;;  %2574 = vmatprep.subr.bf16.mxu1 %v2573_v7  ;;  %v732_v18 = vld [vmem:[#allocation7 + $0x10] sm:$0xff]  ;;  %v750_v23 = vld [vmem:[#allocation7 + $0xa0] sm:$0xff] }
  0x4f   :  { %2544 = vmatpush3.bf16.msra.mxu0 %v2543_v8  ;;  %v2577_v17 = vpack.c.bf16 %v781_v15, %v780_v14  ;;  %v733_v19 = vld [vmem:[#allocation7 + $0x18] sm:$0xff]  ;;  %v764_v20 = vld [vmem:[#allocation7 + $0x110] sm:$0xff]  ;;  %v751_v24 = vld [vmem:[#allocation7 + $0xa8] sm:$0xff] }
  0x50   :  { %2576 = vmatpush3.bf16.msra.mxu1 %v2575_v12  ;;  %v2547_v21 = vpack.c.bf16 %v733_v19, %v732_v18  ;;  %v765_v22 = vld [vmem:[#allocation7 + $0x118] sm:$0xff]  ;;  %2546 = vmatprep.subr.bf16.mxu0 %v2545_v16  ;;  %v2549_v26 = vpack.c.bf16 %v751_v24, %v750_v23  ;;  %v782_v27 = vld [vmem:[#allocation7 + $0x1a0] sm:$0xff]  ;;  %v783_v28 = vld [vmem:[#allocation7 + $0x1a8] sm:$0xff] }
  0x51   :  { %2578 = vmatprep.subr.bf16.mxu1 %v2577_v17  ;;  %v2579_v25 = vpack.c.bf16 %v765_v22, %v764_v20  ;;  %v734_v29 = vld [vmem:[#allocation7 + $0x20] sm:$0xff]  ;;  %v2581_v30 = vpack.c.bf16 %v783_v28, %v782_v27  ;;  %v735_v31 = vld [vmem:[#allocation7 + $0x28] sm:$0xff]  ;;  %v752_v35 = vld [vmem:[#allocation7 + $0xb0] sm:$0xff] }
  0x52   :  { %v766_v32 = vld [vmem:[#allocation7 + $0x120] sm:$0xff]  ;;  %v767_v33 = vld [vmem:[#allocation7 + $0x128] sm:$0xff]  ;;  %v2551_v34 = vpack.c.bf16 %v735_v31, %v734_v29  ;;  %v753_v36 = vld [vmem:[#allocation7 + $0xb8] sm:$0xff] }
  0x53   :  { %2548 = vmatpush3.bf16.msra.mxu0 %v2547_v21  ;;  %v784_v37 = vld [vmem:[#allocation7 + $0x1b0] sm:$0xff]  ;;  %v2583_v38 = vpack.c.bf16 %v767_v33, %v766_v32  ;;  %v2553_v39 = vpack.c.bf16 %v753_v36, %v752_v35  ;;  %v785_v40 = vld [vmem:[#allocation7 + $0x1b8] sm:$0xff]  ;;  %v754_v46 = vld [vmem:[#allocation7 + $0xc0] sm:$0xff] }
  0x54   :  { %2580 = vmatpush3.bf16.msra.mxu1 %v2579_v25  ;;  %2550 = vmatprep.subr.bf16.mxu0 %v2549_v26  ;;  %v736_v41 = vld [vmem:[#allocation7 + $0x30] sm:$0xff]  ;;  %v737_v42 = vld [vmem:[#allocation7 + $0x38] sm:$0xff]  ;;  %v2585_v43 = vpack.c.bf16 %v785_v40, %v784_v37  ;;  %v755_v47 = vld [vmem:[#allocation7 + $0xc8] sm:$0xff] }
  0x55   :  { %2582 = vmatprep.subr.bf16.mxu1 %v2581_v30  ;;  %v768_v44 = vld [vmem:[#allocation7 + $0x130] sm:$0xff]  ;;  %v769_v45 = vld [vmem:[#allocation7 + $0x138] sm:$0xff]  ;;  %v786_v48 = vld [vmem:[#allocation7 + $0x1c0] sm:$0xff]  ;;  %v2555_v50 = vpack.c.bf16 %v737_v42, %v736_v41  ;;  %v2557_v52 = vpack.c.bf16 %v755_v47, %v754_v46 }
  0x56   :  { %v787_v49 = vld [vmem:[#allocation7 + $0x1c8] sm:$0xff]  ;;  %v2587_v51 = vpack.c.bf16 %v769_v45, %v768_v44  ;;  %v738_v53 = vld [vmem:[#allocation7 + $0x40] sm:$0xff]  ;;  %v756_v58 = vld [vmem:[#allocation7 + $0xd0] sm:$0xff] }
  0x57   :  { %2552 = vmatpush3.bf16.msra.mxu0 %v2551_v34  ;;  %v739_v54 = vld [vmem:[#allocation7 + $0x48] sm:$0xff]  ;;  %v770_v55 = vld [vmem:[#allocation7 + $0x140] sm:$0xff]  ;;  %v2589_v56 = vpack.c.bf16 %v787_v49, %v786_v48  ;;  %v757_v59 = vld [vmem:[#allocation7 + $0xd8] sm:$0xff] }
  0x58   :  { %2584 = vmatpush3.bf16.msra.mxu1 %v2583_v38  ;;  %2554 = vmatprep.subr.bf16.mxu0 %v2553_v39  ;;  %v771_v57 = vld [vmem:[#allocation7 + $0x148] sm:$0xff]  ;;  %v788_v60 = vld [vmem:[#allocation7 + $0x1d0] sm:$0xff]  ;;  %v789_v61 = vld [vmem:[#allocation7 + $0x1d8] sm:$0xff]  ;;  %v2559_v62 = vpack.c.bf16 %v739_v54, %v738_v53  ;;  %v2561_v0 = vpack.c.bf16 %v757_v59, %v756_v58 }
  0x59   :  { %2586 = vmatprep.subr.bf16.mxu1 %v2585_v43  ;;  %v2591_v63 = vpack.c.bf16 %v771_v57, %v770_v55  ;;  %v740_v1 = vld [vmem:[#allocation7 + $0x50] sm:$0xff]  ;;  %v741_v2 = vld [vmem:[#allocation7 + $0x58] sm:$0xff]  ;;  %v2593_v4 = vpack.c.bf16 %v789_v61, %v788_v60  ;;  %v758_v6 = vld [vmem:[#allocation7 + $0xe0] sm:$0xff] }
  0x5a   :  { %v772_v3 = vld [vmem:[#allocation7 + $0x150] sm:$0xff]  ;;  %v773_v5 = vld [vmem:[#allocation7 + $0x158] sm:$0xff]  ;;  %v759_v7 = vld [vmem:[#allocation7 + $0xe8] sm:$0xff]  ;;  %v2563_v10 = vpack.c.bf16 %v741_v2, %v740_v1 }
  0x5b   :  { %2556 = vmatpush3.bf16.msra.mxu0 %v2555_v50  ;;  %v790_v8 = vld [vmem:[#allocation7 + $0x1e0] sm:$0xff]  ;;  %v791_v9 = vld [vmem:[#allocation7 + $0x1e8] sm:$0xff]  ;;  %v2595_v13 = vpack.c.bf16 %v773_v5, %v772_v3  ;;  %v2565_v14 = vpack.c.bf16 %v759_v7, %v758_v6  ;;  %v99_v16 = vld [vmem:[#allocation2 + $0x8] sm:$0xff] }
  0x5c   :  { %2588 = vmatpush3.bf16.msra.mxu1 %v2587_v51  ;;  %2558 = vmatprep.subr.bf16.mxu0 %v2557_v52  ;;  %v742_v11 = vld [vmem:[#allocation7 + $0x60] sm:$0xff]  ;;  %v743_v12 = vld [vmem:[#allocation7 + $0x68] sm:$0xff]  ;;  %v2597_v18 = vpack.c.bf16 %v791_v9, %v790_v8  ;;  %v760_v20 = vld [vmem:[#allocation7 + $0xf0] sm:$0xff] }
  0x5d   :  { %2590 = vmatprep.subr.bf16.mxu1 %v2589_v56  ;;  %v774_v15 = vld [vmem:[#allocation7 + $0x160] sm:$0xff]  ;;  %v101_v17 = vld [vmem:[#allocation2 + $0x18] sm:$0xff]  ;;  %v761_v21 = vld [vmem:[#allocation7 + $0xf8] sm:$0xff]  ;;  %890 = vmatprep.mubr.f32.mxu0 %v99_v16  ;;  %v2567_v24 = vpack.c.bf16 %v743_v12, %v742_v11 }
  0x5e   :  { %v775_v19 = vld [vmem:[#allocation7 + $0x168] sm:$0xff]  ;;  %v792_v22 = vld [vmem:[#allocation7 + $0x1f0] sm:$0xff]  ;;  %v793_v23 = vld [vmem:[#allocation7 + $0x1f8] sm:$0xff]  ;;  %960 = vmatprep.mubr.f32.mxu1 %v101_v17  ;;  %v2569_v26 = vpack.c.bf16 %v761_v21, %v760_v20 }
  0x5f   :  { %2560 = vmatpush3.bf16.msra.mxu0 %v2559_v62  ;;  %v2599_v25 = vpack.c.bf16 %v775_v19, %v774_v15  ;;  %v744_v27 = vld [vmem:[#allocation7 + $0x70] sm:$0xff]  ;;  %v745_v28 = vld [vmem:[#allocation7 + $0x78] sm:$0xff]  ;;  %v2601_v30 = vpack.c.bf16 %v793_v23, %v792_v22  ;;  %v810_v32 = vld [vmem:[#allocation7 + $0x280] sm:$0xff] }
  0x60   :  { %2592 = vmatpush3.bf16.msra.mxu1 %v2591_v63  ;;  %2562 = vmatprep.subr.bf16.mxu0 %v2561_v0  ;;  %v776_v29 = vld [vmem:[#allocation7 + $0x170] sm:$0xff]  ;;  %v777_v31 = vld [vmem:[#allocation7 + $0x178] sm:$0xff]  ;;  %v811_v33 = vld [vmem:[#allocation7 + $0x288] sm:$0xff]  ;;  %v2571_v36 = vpack.c.bf16 %v745_v28, %v744_v27 }
  0x61   :  { %2594 = vmatprep.subr.bf16.mxu1 %v2593_v4  ;;  %v650_v34 = vld [vmem:[%s4667_s3 + $0x80] sm:$0xff]  ;;  %v651_v35 = vld [vmem:[%s4667_s3 + $0x88] sm:$0xff]  ;;  %v2603_v37 = vpack.c.bf16 %v777_v31, %v776_v29  ;;  %v2605_v38 = vpack.c.bf16 %v811_v33, %v810_v32  ;;  %v794_v39 = vld [vmem:[#allocation7 + $0x200] sm:$0xff] }
  0x62   :  { %v795_v40 = vld [vmem:[#allocation7 + $0x208] sm:$0xff]  ;;  %v634_v41 = vld [vmem:[%s4667_s3] sm:$0xff]  ;;  %v2637_v42 = vpack.c.bf16 %v651_v35, %v650_v34  ;;  %v635_v43 = vld [vmem:[%s4667_s3 + $0x8] sm:$0xff] }
  0x63   :  { %2564 = vmatpush3.bf16.msra.mxu0 %v2563_v10  ;;  %v812_v44 = vld [vmem:[#allocation7 + $0x290] sm:$0xff]  ;;  %v813_v45 = vld [vmem:[#allocation7 + $0x298] sm:$0xff]  ;;  %v652_v46 = vld [vmem:[%s4667_s3 + $0x90] sm:$0xff]  ;;  %v2607_v50 = vpack.c.bf16 %v795_v40, %v794_v39  ;;  %v2639_v51 = vpack.c.bf16 %v635_v43, %v634_v41 }
  0x64   :  { %2596 = vmatpush3.bf16.msra.mxu1 %v2595_v13  ;;  %2566 = vmatprep.subr.bf16.mxu0 %v2565_v14  ;;  %v653_v47 = vld [vmem:[%s4667_s3 + $0x98] sm:$0xff]  ;;  %v98_v48 = vld [vmem:[#allocation2] sm:$0xff]  ;;  %v100_v49 = vld [vmem:[#allocation2 + $0x10] sm:$0xff]  ;;  %v2609_v52 = vpack.c.bf16 %v813_v45, %v812_v44 }
  0x65   :  { %2598 = vmatprep.subr.bf16.mxu1 %v2597_v18  ;;  %v796_v53 = vld [vmem:[#allocation7 + $0x210] sm:$0xff]  ;;  %v797_v54 = vld [vmem:[#allocation7 + $0x218] sm:$0xff]  ;;  %v636_v55 = vld [vmem:[%s4667_s3 + $0x10] sm:$0xff]  ;;  %v2641_v56 = vpack.c.bf16 %v653_v47, %v652_v46 }
  0x66   :  { %v637_v57 = vld [vmem:[%s4667_s3 + $0x18] sm:$0xff]  ;;  %v814_v58 = vld [vmem:[#allocation7 + $0x2a0] sm:$0xff]  ;;  %v654_v60 = vld [vmem:[%s4667_s3 + $0xa0] sm:$0xff]  ;;  %v2611_v62 = vpack.c.bf16 %v797_v54, %v796_v53 }
  0x67   :  { %2568 = vmatpush3.bf16.msra.mxu0 %v2567_v24  ;;  %v815_v59 = vld [vmem:[#allocation7 + $0x2a8] sm:$0xff]  ;;  %v655_v61 = vld [vmem:[%s4667_s3 + $0xa8] sm:$0xff]  ;;  %v2643_v63 = vpack.c.bf16 %v637_v57, %v636_v55  ;;  %v798_v1 = vld [vmem:[#allocation7 + $0x220] sm:$0xff] }
  0x68   :  { %2600 = vmatpush3.bf16.msra.mxu1 %v2599_v25  ;;  %2570 = vmatprep.subr.bf16.mxu0 %v2569_v26  ;;  %v2613_v0 = vpack.c.bf16 %v815_v59, %v814_v58  ;;  %v799_v2 = vld [vmem:[#allocation7 + $0x228] sm:$0xff]  ;;  %v638_v3 = vld [vmem:[%s4667_s3 + $0x20] sm:$0xff]  ;;  %v2645_v4 = vpack.c.bf16 %v655_v61, %v654_v60  ;;  %v639_v5 = vld [vmem:[%s4667_s3 + $0x28] sm:$0xff] }
  0x69   :  { %2602 = vmatprep.subr.bf16.mxu1 %v2601_v30  ;;  %v816_v6 = vld [vmem:[#allocation7 + $0x2b0] sm:$0xff]  ;;  %v817_v7 = vld [vmem:[#allocation7 + $0x2b8] sm:$0xff]  ;;  %v656_v8 = vld [vmem:[%s4667_s3 + $0xb0] sm:$0xff]  ;;  %v2615_v10 = vpack.c.bf16 %v799_v2, %v798_v1  ;;  %v2647_v11 = vpack.c.bf16 %v639_v5, %v638_v3 }
  0x6a   :  { %v657_v9 = vld [vmem:[%s4667_s3 + $0xb8] sm:$0xff]  ;;  %v2617_v12 = vpack.c.bf16 %v817_v7, %v816_v6  ;;  %v800_v13 = vld [vmem:[#allocation7 + $0x230] sm:$0xff]  ;;  %v801_v14 = vld [vmem:[#allocation7 + $0x238] sm:$0xff] }
  0x6b   :  { %2572 = vmatpush3.bf16.msra.mxu0 %v2571_v36  ;;  %v640_v15 = vld [vmem:[%s4667_s3 + $0x30] sm:$0xff]  ;;  %v2649_v16 = vpack.c.bf16 %v657_v9, %v656_v8  ;;  %v641_v17 = vld [vmem:[%s4667_s3 + $0x38] sm:$0xff]  ;;  %v658_v20 = vld [vmem:[%s4667_s3 + $0xc0] sm:$0xff]  ;;  %v2619_v22 = vpack.c.bf16 %v801_v14, %v800_v13 }
  0x6c   :  { %2604 = vmatpush3.bf16.msra.mxu1 %v2603_v37  ;;  %2606 = vmatprep.subr.bf16.mxu0 %v2605_v38  ;;  %v818_v18 = vld [vmem:[#allocation7 + $0x2c0] sm:$0xff]  ;;  %v819_v19 = vld [vmem:[#allocation7 + $0x2c8] sm:$0xff]  ;;  %v659_v21 = vld [vmem:[%s4667_s3 + $0xc8] sm:$0xff]  ;;  %v2651_v25 = vpack.c.bf16 %v641_v17, %v640_v15 }
  0x6d   :  { %2638 = vmatprep.subr.bf16.mxu1 %v2637_v42  ;;  %v103_v23 = vld [vmem:[#allocation2 + $0x28] sm:$0xff]  ;;  %v2621_v26 = vpack.c.bf16 %v819_v19, %v818_v18  ;;  %v802_v27 = vld [vmem:[#allocation7 + $0x240] sm:$0xff]  ;;  %v803_v28 = vld [vmem:[#allocation7 + $0x248] sm:$0xff]  ;;  %v2653_v30 = vpack.c.bf16 %v659_v21, %v658_v20 }
  0x6e   :  { %891 = vmatmul.mubr.f32.vlgmr.msra.gmra.mrb[0].mxu0 %v98_v48  ;;  %v93_v24 = vld [vmem:[%s4664_s0 + $0x8] sm:$0xff]  ;;  %v642_v29 = vld [vmem:[%s4667_s3 + $0x40] sm:$0xff]  ;;  %v660_v34 = vld [vmem:[%s4667_s3 + $0xd0] sm:$0xff]  ;;  %v2623_v36 = vpack.c.bf16 %v803_v28, %v802_v27 }
  0x6f   :  { %961 = vmatmul.mubr.f32.vlgmr.msra.gmra.mrb[0].mxu1 %v100_v49  ;;  %2608 = vmatpush3.bf16.msra.mxu0 %v2607_v50  ;;  %v643_v31 = vld [vmem:[%s4667_s3 + $0x48] sm:$0xff]  ;;  %v820_v32 = vld [vmem:[#allocation7 + $0x2d0] sm:$0xff]  ;;  %v661_v35 = vld [vmem:[%s4667_s3 + $0xd8] sm:$0xff] }
  0x70   :  { %2640 = vmatpush3.bf16.msra.mxu1 %v2639_v51  ;;  %2610 = vmatprep.subr.bf16.mxu0 %v2609_v52  ;;  %v821_v33 = vld [vmem:[#allocation7 + $0x2d8] sm:$0xff]  ;;  %v2655_v37 = vpack.c.bf16 %v643_v31, %v642_v29  ;;  %v804_v39 = vld [vmem:[#allocation7 + $0x250] sm:$0xff]  ;;  %v644_v41 = vld [vmem:[%s4667_s3 + $0x50] sm:$0xff]  ;;  %v2657_v42 = vpack.c.bf16 %v661_v35, %v660_v34 }
  0x71   :  { %2642 = vmatprep.subr.bf16.mxu1 %v2641_v56  ;;  %1030 = vmatprep.mubr.f32.mxu0 %v103_v23  ;;  %v2625_v38 = vpack.c.bf16 %v821_v33, %v820_v32  ;;  %v805_v40 = vld [vmem:[#allocation7 + $0x258] sm:$0xff]  ;;  %v645_v43 = vld [vmem:[%s4667_s3 + $0x58] sm:$0xff]  ;;  %v822_v44 = vld [vmem:[#allocation7 + $0x2e0] sm:$0xff] }
  0x72   :  { %1100 = vmatprep.mubr.f32.mxu1 %v93_v24  ;;  %v823_v45 = vld [vmem:[#allocation7 + $0x2e8] sm:$0xff]  ;;  %v662_v46 = vld [vmem:[%s4667_s3 + $0xe0] sm:$0xff]  ;;  %v663_v47 = vld [vmem:[%s4667_s3 + $0xe8] sm:$0xff]  ;;  %v2627_v48 = vpack.c.bf16 %v805_v40, %v804_v39  ;;  %v2659_v49 = vpack.c.bf16 %v645_v43, %v644_v41 }
  0x73   :  { %2612 = vmatpush3.bf16.msra.mxu0 %v2611_v62  ;;  %v2629_v50 = vpack.c.bf16 %v823_v45, %v822_v44  ;;  %v806_v51 = vld [vmem:[#allocation7 + $0x260] sm:$0xff]  ;;  %v807_v52 = vld [vmem:[#allocation7 + $0x268] sm:$0xff]  ;;  %v646_v53 = vld [vmem:[%s4667_s3 + $0x60] sm:$0xff]  ;;  %v2661_v54 = vpack.c.bf16 %v663_v47, %v662_v46 }
  0x74   :  { %2644 = vmatpush3.bf16.msra.mxu1 %v2643_v63  ;;  %2614 = vmatprep.subr.bf16.mxu0 %v2613_v0  ;;  %v647_v55 = vld [vmem:[%s4667_s3 + $0x68] sm:$0xff]  ;;  %v824_v56 = vld [vmem:[#allocation7 + $0x2f0] sm:$0xff]  ;;  %v664_v58 = vld [vmem:[%s4667_s3 + $0xf0] sm:$0xff]  ;;  %v2631_v60 = vpack.c.bf16 %v807_v52, %v806_v51 }
  0x75   :  { %2646 = vmatprep.subr.bf16.mxu1 %v2645_v4  ;;  %v825_v57 = vld [vmem:[#allocation7 + $0x2f8] sm:$0xff]  ;;  %v665_v59 = vld [vmem:[%s4667_s3 + $0xf8] sm:$0xff]  ;;  %v2663_v61 = vpack.c.bf16 %v647_v55, %v646_v53  ;;  %v808_v63 = vld [vmem:[#allocation7 + $0x270] sm:$0xff] }
  0x76   :  { %v2633_v62 = vpack.c.bf16 %v825_v57, %v824_v56  ;;  %v809_v0 = vld [vmem:[#allocation7 + $0x278] sm:$0xff]  ;;  %v648_v1 = vld [vmem:[%s4667_s3 + $0x70] sm:$0xff]  ;;  %v2665_v2 = vpack.c.bf16 %v665_v59, %v664_v58  ;;  %v649_v3 = vld [vmem:[%s4667_s3 + $0x78] sm:$0xff] }
  0x77   :  { %2616 = vmatpush3.bf16.msra.mxu0 %v2615_v10  ;;  %v682_v4 = vld [vmem:[%s4667_s3 + $0x180] sm:$0xff]  ;;  %v683_v5 = vld [vmem:[%s4667_s3 + $0x188] sm:$0xff]  ;;  %v2635_v8 = vpack.c.bf16 %v809_v0, %v808_v63  ;;  %v2667_v9 = vpack.c.bf16 %v649_v3, %v648_v1  ;;  %v685_v17 = vld [vmem:[%s4667_s3 + $0x198] sm:$0xff] }
  0x78   :  { %2648 = vmatpush3.bf16.msra.mxu1 %v2647_v11  ;;  %2618 = vmatprep.subr.bf16.mxu0 %v2617_v12  ;;  %v714_v6 = vld [vmem:[%s4667_s3 + $0x280] sm:$0xff]  ;;  %v715_v7 = vld [vmem:[%s4667_s3 + $0x288] sm:$0xff]  ;;  %v2669_v10 = vpack.c.bf16 %v683_v5, %v682_v4  ;;  %v716_v18 = vld [vmem:[%s4667_s3 + $0x290] sm:$0xff] }
  0x79   :  { %2650 = vmatprep.subr.bf16.mxu1 %v2649_v16  ;;  %v666_v11 = vld [vmem:[%s4667_s3 + $0x100] sm:$0xff]  ;;  %v667_v12 = vld [vmem:[%s4667_s3 + $0x108] sm:$0xff]  ;;  %v2701_v14 = vpack.c.bf16 %v715_v7, %v714_v6  ;;  %v684_v16 = vld [vmem:[%s4667_s3 + $0x190] sm:$0xff] }
  0x7a   :  { %v698_v13 = vld [vmem:[%s4667_s3 + $0x200] sm:$0xff]  ;;  %v699_v15 = vld [vmem:[%s4667_s3 + $0x208] sm:$0xff]  ;;  %v717_v19 = vld [vmem:[%s4667_s3 + $0x298] sm:$0xff]  ;;  %v2673_v24 = vpack.c.bf16 %v685_v17, %v684_v16 }
  0x7b   :  { %2620 = vmatpush3.bf16.msra.mxu0 %v2619_v22  ;;  %v102_v20 = vld [vmem:[#allocation2 + $0x20] sm:$0xff]  ;;  %v2671_v22 = vpack.c.bf16 %v667_v12, %v666_v11  ;;  %v2703_v23 = vpack.c.bf16 %v699_v15, %v698_v13  ;;  %v700_v27 = vld [vmem:[%s4667_s3 + $0x210] sm:$0xff]  ;;  %v2705_v28 = vpack.c.bf16 %v717_v19, %v716_v18  ;;  %v701_v29 = vld [vmem:[%s4667_s3 + $0x218] sm:$0xff] }
  0x7c   :  { %2652 = vmatpush3.bf16.msra.mxu1 %v2651_v25  ;;  %2622 = vmatprep.subr.bf16.mxu0 %v2621_v26  ;;  %v92_v21 = vld [vmem:[%s4664_s0] sm:$0xff]  ;;  %v668_v25 = vld [vmem:[%s4667_s3 + $0x110] sm:$0xff]  ;;  %v669_v26 = vld [vmem:[%s4667_s3 + $0x118] sm:$0xff] }
  0x7d   :  { %2654 = vmatprep.subr.bf16.mxu1 %v2653_v30  ;;  %v686_v30 = vld [vmem:[%s4667_s3 + $0x1a0] sm:$0xff]  ;;  %v687_v31 = vld [vmem:[%s4667_s3 + $0x1a8] sm:$0xff]  ;;  %v95_v34 = vld [vmem:[%s4664_s0 + $0x18] sm:$0xff]  ;;  %v2675_v35 = vpack.c.bf16 %v669_v26, %v668_v25 }
  0x7e   :  { %v718_v32 = vld [vmem:[%s4667_s3 + $0x2a0] sm:$0xff]  ;;  %v719_v33 = vld [vmem:[%s4667_s3 + $0x2a8] sm:$0xff]  ;;  %v2677_v39 = vpack.c.bf16 %v687_v31, %v686_v30  ;;  %v688_v44 = vld [vmem:[%s4667_s3 + $0x1b0] sm:$0xff] }
  0x7f   :  { %2624 = vmatpush3.bf16.msra.mxu0 %v2623_v36  ;;  %v670_v36 = vld [vmem:[%s4667_s3 + $0x120] sm:$0xff]  ;;  %v671_v40 = vld [vmem:[%s4667_s3 + $0x128] sm:$0xff]  ;;  %v2709_v43 = vpack.c.bf16 %v719_v33, %v718_v32  ;;  %v689_v45 = vld [vmem:[%s4667_s3 + $0x1b8] sm:$0xff] }
  0x80   :  { %2656 = vmatpush3.bf16.msra.mxu1 %v2655_v37  ;;  %2626 = vmatprep.subr.bf16.mxu0 %v2625_v38  ;;  %v97_v37 = vld [vmem:[%s4664_s0 + $0x28] sm:$0xff]  ;;  %v2707_v38 = vpack.c.bf16 %v701_v29, %v700_v27  ;;  %v702_v41 = vld [vmem:[%s4667_s3 + $0x220] sm:$0xff]  ;;  %v3440_v46 = vld [vmem:[%s4667_s3 + $0x2b0] sm:$0xff]  ;;  %v2681_v58 = vpack.c.bf16 %v689_v45, %v688_v44 }
  0x81   :  { %2658 = vmatprep.subr.bf16.mxu1 %v2657_v42  ;;  %v703_v42 = vld [vmem:[%s4667_s3 + $0x228] sm:$0xff]  ;;  %v3445_v47 = vld [vmem:[%s4667_s3 + $0x2b8] sm:$0xff]  ;;  %v3460_v51 = vld [vmem:[%s4667_s3 + $0x230] sm:$0xff] }
  0x82   :  { %v3465_v52 = vld [vmem:[%s4667_s3 + $0x238] sm:$0xff]  ;;  %v3470_v53 = vld [vmem:[%s4667_s3 + $0x1c0] sm:$0xff]  ;;  %v3485_v56 = vld [vmem:[%s4667_s3 + $0x2c8] sm:$0xff]  ;;  %v2711_v57 = vpack.c.bf16 %v703_v42, %v702_v41  ;;  %v2713_v3 = vpack.c.bf16 %v3445_v47, %v3440_v46 }
  0x83   :  { %2628 = vmatpush3.bf16.msra.mxu0 %v2627_v48  ;;  %v3450_v48 = vld [vmem:[%s4667_s3 + $0x130] sm:$0xff]  ;;  %v3480_v55 = vld [vmem:[%s4667_s3 + $0x2c0] sm:$0xff]  ;;  %v3515_v0 = vld [vmem:[%s4667_s3 + $0x1d8] sm:$0xff]  ;;  %v2715_v27 = vpack.c.bf16 %v3465_v52, %v3460_v51 }
  0x84   :  { %2660 = vmatpush3.bf16.msra.mxu1 %v2659_v49  ;;  %2630 = vmatprep.subr.bf16.mxu0 %v2629_v50  ;;  %v3455_v49 = vld [vmem:[%s4667_s3 + $0x138] sm:$0xff]  ;;  %v2679_v50 = vpack.c.bf16 %v671_v40, %v670_v36  ;;  %v3490_v59 = vld [vmem:[%s4667_s3 + $0x140] sm:$0xff]  ;;  %v3510_v63 = vld [vmem:[%s4667_s3 + $0x1d0] sm:$0xff]  ;;  %v2717_v29 = vpack.c.bf16 %v3485_v56, %v3480_v55 }
  0x85   :  { %2662 = vmatprep.subr.bf16.mxu1 %v2661_v54  ;;  %v3475_v54 = vld [vmem:[%s4667_s3 + $0x1c8] sm:$0xff]  ;;  %v3520_v1 = vld [vmem:[%s4667_s3 + $0x2d0] sm:$0xff]  ;;  %v3537_v5 = vld [vmem:[%s4667_s3 + $0x158] sm:$0xff] }
  0x86   :  { %v3532_v4 = vld [vmem:[%s4667_s3 + $0x150] sm:$0xff]  ;;  %v3547_v7 = vld [vmem:[%s4667_s3 + $0x258] sm:$0xff]  ;;  %v3567_v11 = vld [vmem:[%s4667_s3 + $0x2e8] sm:$0xff] }
  0x87   :  { %2632 = vmatpush3.bf16.msra.mxu0 %v2631_v60  ;;  %v3495_v60 = vld [vmem:[%s4667_s3 + $0x148] sm:$0xff]  ;;  %v3542_v6 = vld [vmem:[%s4667_s3 + $0x250] sm:$0xff]  ;;  %4723 = vst [vmem:[#allocation16_spill] sm:$0xff] %v3567_v11  ;;  %v3572_v12 = vld [vmem:[%s4667_s3 + $0x160] sm:$0xff] }
  0x88   :  { %2664 = vmatpush3.bf16.msra.mxu1 %v2663_v61  ;;  %2634 = vmatprep.subr.bf16.mxu0 %v2633_v62  ;;  %v3500_v61 = vld [vmem:[%s4667_s3 + $0x240] sm:$0xff]  ;;  %v3505_v62 = vld [vmem:[%s4667_s3 + $0x248] sm:$0xff]  ;;  %v3592_v16 = vld [vmem:[%s4667_s3 + $0x1f0] sm:$0xff] }
  0x89   :  { %2666 = vmatprep.subr.bf16.mxu1 %v2665_v2  ;;  %v3525_v2 = vld [vmem:[%s4667_s3 + $0x2d8] sm:$0xff]  ;;  %v3577_v13 = vld [vmem:[%s4667_s3 + $0x168] sm:$0xff]  ;;  %4725 = vst [vmem:[#allocation18_spill] sm:$0xff] %v3592_v16  ;;  %v3602_v18 = vld [vmem:[%s4667_s3 + $0x2f0] sm:$0xff] }
  0x8a   :  { %v3587_v15 = vld [vmem:[%s4667_s3 + $0x268] sm:$0xff]  ;;  %v3597_v17 = vld [vmem:[%s4667_s3 + $0x1f8] sm:$0xff]  ;;  %4727 = vst [vmem:[#allocation20_spill] sm:$0xff] %v3602_v18  ;;  %v3631_v25 = vld [vmem:[#allocation8 + $0x80] sm:$0xff] }
  0x8b   :  { %2636 = vmatpush3.bf16.msra.mxu0 %v2635_v8  ;;  %v3552_v8 = vld [vmem:[%s4667_s3 + $0x1e0] sm:$0xff]  ;;  %4726 = vst [vmem:[#allocation19_spill] sm:$0xff] %v3597_v17  ;;  %v3607_v19 = vld [vmem:[%s4667_s3 + $0x2f8] sm:$0xff]  ;;  %4733 = vst [vmem:[#allocation26_spill] sm:$0xff] %v3631_v25 }
  0x8c   :  { %2668 = vmatpush3.bf16.msra.mxu1 %v2667_v9  ;;  %2670 = vmatprep.subr.bf16.mxu0 %v2669_v10  ;;  %v3557_v9 = vld [vmem:[%s4667_s3 + $0x1e8] sm:$0xff]  ;;  %v3562_v10 = vld [vmem:[%s4667_s3 + $0x2e0] sm:$0xff]  ;;  %4728 = vst [vmem:[#allocation21_spill] sm:$0xff] %v3607_v19  ;;  %v3633_v26 = vld [vmem:[#allocation8 + $0x88] sm:$0xff] }
  0x8d   :  { %2702 = vmatprep.subr.bf16.mxu1 %v2701_v14  ;;  %4722 = vst [vmem:[#allocation15_spill] sm:$0xff] %v3562_v10  ;;  %v3582_v14 = vld [vmem:[%s4667_s3 + $0x260] sm:$0xff]  ;;  %4734 = vst [vmem:[#allocation27_spill] sm:$0xff] %v3633_v26  ;;  %v3641_v30 = vld [vmem:[#allocation8 + $0x180] sm:$0xff] }
  0x8e   :  { %1031 = vmatmul.mubr.f32.vlgmr.msra.gmra.mrb[2].mxu0 %v102_v20  ;;  %4724 = vst [vmem:[#allocation17_spill] sm:$0xff] %v3582_v14  ;;  %v2683_v20 = vpack.c.bf16 %v3455_v49, %v3450_v48  ;;  %v3643_v31 = vld [vmem:[#allocation8 + $0x188] sm:$0xff]  ;;  %v3645_v32 = vld [vmem:[#allocation8] sm:$0xff]  ;;  %v3653_v36 = vld [vmem:[#allocation8 + $0x90] sm:$0xff] }
  0x8f   :  { %1101 = vmatmul.mubr.f32.vlgmr.msra.gmra.mrb[2].mxu1 %v92_v21  ;;  %2672 = vmatpush3.bf16.msra.mxu0 %v2671_v22  ;;  %v3614_v21 = vld [vmem:[%s4667_s3 + $0x170] sm:$0xff]  ;;  %v3619_v22 = vld [vmem:[%s4667_s3 + $0x178] sm:$0xff]  ;;  %4737 = vst [vmem:[#allocation30_spill] sm:$0xff] %v3653_v36  ;;  %v3665_v42 = vld [vmem:[#allocation8 + $0x190] sm:$0xff] }
  0x90   :  { %2704 = vmatpush3.bf16.msra.mxu1 %v2703_v23  ;;  %2674 = vmatprep.subr.bf16.mxu0 %v2673_v24  ;;  %4729 = vst [vmem:[#allocation22_spill] sm:$0xff] %v3614_v21  ;;  %4730 = vst [vmem:[#allocation23_spill] sm:$0xff] %v3619_v22  ;;  %v3624_v23 = vld [vmem:[%s4667_s3 + $0x270] sm:$0xff]  ;;  %v3629_v24 = vld [vmem:[%s4667_s3 + $0x278] sm:$0xff] }
  0x91   :  { %2706 = vmatprep.subr.bf16.mxu1 %v2705_v28  ;;  %1170 = vmatprep.mubr.f32.mxu0 %v95_v34  ;;  %4731 = vst [vmem:[#allocation24_spill] sm:$0xff] %v3624_v23  ;;  %4732 = vst [vmem:[#allocation25_spill] sm:$0xff] %v3629_v24  ;;  %v2685_v28 = vpack.c.bf16 %v3475_v54, %v3470_v53  ;;  %v3647_v33 = vld [vmem:[#allocation8 + $0x8] sm:$0xff]  ;;  %v3649_v34 = vld [vmem:[#allocation8 + $0x100] sm:$0xff] }
  0x92   :  { %1240 = vmatprep.mubr.f32.mxu1 %v97_v37  ;;  %4735 = vst [vmem:[#allocation28_spill] sm:$0xff] %v3649_v34  ;;  %v3655_v37 = vld [vmem:[#allocation8 + $0x98] sm:$0xff]  ;;  %v3669_v44 = vld [vmem:[#allocation8 + $0x10] sm:$0xff]  ;;  %v3677_v48 = vld [vmem:[#allocation8 + $0xa0] sm:$0xff] }
  0x93   :  { %2676 = vmatpush3.bf16.msra.mxu0 %v2675_v35  ;;  %v3651_v35 = vld [vmem:[#allocation8 + $0x108] sm:$0xff]  ;;  %4738 = vst [vmem:[#allocation31_spill] sm:$0xff] %v3655_v37  ;;  %v3671_v45 = vld [vmem:[#allocation8 + $0x18] sm:$0xff]  ;;  %v3673_v46 = vld [vmem:[#allocation8 + $0x110] sm:$0xff] }
  0x94   :  { %2708 = vmatpush3.bf16.msra.mxu1 %v2707_v38  ;;  %2678 = vmatprep.subr.bf16.mxu0 %v2677_v39  ;;  %4736 = vst [vmem:[#allocation29_spill] sm:$0xff] %v3651_v35  ;;  %4739 = vst [vmem:[#allocation32_spill] sm:$0xff] %v3673_v46  ;;  %v3675_v47 = vld [vmem:[#allocation8 + $0x118] sm:$0xff]  ;;  %v3679_v49 = vld [vmem:[#allocation8 + $0xa8] sm:$0xff]  ;;  %v4746_v35 = vpack.c.bf16 %v3495_v60, %v3490_v59  ;;  %v4748_v59 = vpack.c.bf16 %v3505_v62, %v3500_v61 }
  0x95   :  { %2710 = vmatprep.subr.bf16.mxu1 %v2709_v43  ;;  %v3667_v43 = vld [vmem:[#allocation8 + $0x198] sm:$0xff]  ;;  %4740 = vst [vmem:[#allocation33_spill] sm:$0xff] %v3677_v48  ;;  %4741 = vst [vmem:[#allocation34_spill] sm:$0xff] %v3679_v49  ;;  %v3689_v54 = vld [vmem:[#allocation8 + $0x1a0] sm:$0xff]  ;;  %v4749_v60 = vpack.c.bf16 %v3515_v0, %v3510_v63  ;;  %v4753_v61 = vpack.c.bf16 %v3525_v2, %v3520_v1 }
  0x96   :  { %v3691_v55 = vld [vmem:[#allocation8 + $0x1a8] sm:$0xff]  ;;  %v3693_v56 = vld [vmem:[#allocation8 + $0x20] sm:$0xff]  ;;  %v3703_v51 = vld [vmem:[#allocation8 + $0xb8] sm:$0xff] }
  0x97   :  { %2680 = vmatpush3.bf16.msra.mxu0 %v2679_v50  ;;  %v3701_v50 = vld [vmem:[#allocation8 + $0xb0] sm:$0xff]  ;;  %v3715_v38 = vld [vmem:[#allocation8 + $0x1b8] sm:$0xff]  ;;  %v3731_v18 = vld [vmem:[#allocation8 + $0xc0] sm:$0xff] }
  0x98   :  { %2712 = vmatpush3.bf16.msra.mxu1 %v2711_v57  ;;  %2682 = vmatprep.subr.bf16.mxu0 %v2681_v58  ;;  %v3695_v57 = vld [vmem:[#allocation8 + $0x28] sm:$0xff]  ;;  %v3697_v58 = vld [vmem:[#allocation8 + $0x120] sm:$0xff]  ;;  %4742 = vst [vmem:[#allocation35_spill] sm:$0xff] %v3701_v50  ;;  %v3713_v39 = vld [vmem:[#allocation8 + $0x1b0] sm:$0xff] }
  0x99   :  { %2714 = vmatprep.subr.bf16.mxu1 %v2713_v3  ;;  %v3699_v3 = vld [vmem:[#allocation8 + $0x128] sm:$0xff]  ;;  %v3717_v10 = vld [vmem:[#allocation8 + $0x30] sm:$0xff]  ;;  %v3719_v11 = vld [vmem:[#allocation8 + $0x38] sm:$0xff] }
  0x9a   :  { %v3723_v53 = vld [vmem:[#allocation8 + $0x138] sm:$0xff]  ;;  %v3733_v19 = vld [vmem:[#allocation8 + $0xc8] sm:$0xff]  ;;  %v3735_v16 = vld [vmem:[#allocation8 + $0x1c0] sm:$0xff] }
  0x9b   :  { %2684 = vmatpush3.bf16.msra.mxu0 %v2683_v20  ;;  %v3721_v20 = vld [vmem:[#allocation8 + $0x130] sm:$0xff]  ;;  %v3737_v17 = vld [vmem:[#allocation8 + $0x1c8] sm:$0xff]  ;;  %v3739_v14 = vld [vmem:[#allocation8 + $0x40] sm:$0xff] }
  0x9c   :  { %2716 = vmatpush3.bf16.msra.mxu1 %v2715_v27  ;;  %2686 = vmatprep.subr.bf16.mxu0 %v2685_v28  ;;  %v3741_v27 = vld [vmem:[#allocation8 + $0x48] sm:$0xff]  ;;  %v3743_v28 = vld [vmem:[#allocation8 + $0x140] sm:$0xff]  ;;  %v3755_v23 = vld [vmem:[#allocation8 + $0xd0] sm:$0xff] }
  0x9d   :  { %v3745_v41 = vld [vmem:[#allocation8 + $0x148] sm:$0xff]  ;;  %2718 = vmatprep.subr.bf16.mxu1 %v2717_v29  ;;  %v3757_v24 = vld [vmem:[#allocation8 + $0xd8] sm:$0xff]  ;;  %v3759_v21 = vld [vmem:[#allocation8 + $0x1d0] sm:$0xff] }
  0x9e   :  { %v3761_v22 = vld [vmem:[#allocation8 + $0x1d8] sm:$0xff]  ;;  %v3763_v29 = vld [vmem:[#allocation8 + $0x50] sm:$0xff]  ;;  %v3790_v48 = vld [vmem:[#allocation8 + $0xe0] sm:$0xff] }
  0x9f   :  { %4743 = vst [vmem:[#allocation36_spill] sm:$0xff] %v3763_v29  ;;  %v3773_v36 = vld [vmem:[#allocation8 + $0x58] sm:$0xff]  ;;  %v3775_v37 = vld [vmem:[#allocation8 + $0x150] sm:$0xff]  ;;  %2688 = vmatpush3.bf16.msra.mxu0 %v4746_v35  ;;  %v3792_v49 = vld [vmem:[#allocation8 + $0xe8] sm:$0xff]  ;;  %v4760_v35 = vpack.c.bf16 %v3537_v5, %v3532_v4  ;;  %v4764_v4 = vpack.c.bf16 %v3547_v7, %v3542_v6  ;;  %v4765_v5 = vpack.c.bf16 %v3557_v9, %v3552_v8 }
  0xa0   :  { %4744 = vst [vmem:[#allocation37_spill] sm:$0xff] %v3775_v37  ;;  %v3777_v34 = vld [vmem:[#allocation8 + $0x158] sm:$0xff]  ;;  %v3794_v46 = vld [vmem:[#allocation8 + $0x1e0] sm:$0xff]  ;;  %2720 = vmatpush3.bf16.msra.mxu1 %v4748_v59  ;;  %2690 = vmatprep.subr.bf16.mxu0 %v4749_v60  ;;  %v3808_v40 = vld [vmem:[#allocation8 + $0x1e8] sm:$0xff] }
  0xa1   :  { %4745 = vst [vmem:[#allocation38_spill] sm:$0xff] %v3777_v34  ;;  %4747 = vst [vmem:[#allocation39_spill] sm:$0xff] %v3794_v46  ;;  %v3810_v52 = vld [vmem:[#allocation8 + $0x60] sm:$0xff]  ;;  %v3812_v50 = vld [vmem:[#allocation8 + $0x68] sm:$0xff]  ;;  %2722 = vmatprep.subr.bf16.mxu1 %v4753_v61 }
  0xa2   :  { %4750 = vst [vmem:[#allocation40_spill] sm:$0xff] %v3808_v40  ;;  %4751 = vst [vmem:[#allocation41_spill] sm:$0xff] %v3810_v52  ;;  %v3825_v60 = vld [vmem:[#allocation8 + $0x160] sm:$0xff]  ;;  %v3827_v25 = vld [vmem:[#allocation8 + $0x168] sm:$0xff] }
  0xa3   :  { %4752 = vst [vmem:[#allocation42_spill] sm:$0xff] %v3812_v50  ;;  %4754 = vst [vmem:[#allocation43_spill] sm:$0xff] %v3825_v60  ;;  %v3829_v26 = vld [vmem:[#allocation8 + $0xf0] sm:$0xff]  ;;  %v3839_v63 = vld [vmem:[#allocation8 + $0xf8] sm:$0xff]  ;;  %2692 = vmatpush3.bf16.msra.mxu0 %v4760_v35 }
  0xa4   :  { %4755 = vst [vmem:[#allocation44_spill] sm:$0xff] %v3827_v25  ;;  %4756 = vst [vmem:[#allocation45_spill] sm:$0xff] %v3829_v26  ;;  %v3841_v59 = vld [vmem:[#allocation8 + $0x1f0] sm:$0xff]  ;;  %v3843_v62 = vld [vmem:[#allocation8 + $0x1f8] sm:$0xff]  ;;  %2724 = vmatpush3.bf16.msra.mxu1 %v4764_v4  ;;  %2694 = vmatprep.subr.bf16.mxu0 %v4765_v5 }
  0xa5   :  { %4757 = vst [vmem:[#allocation46_spill] sm:$0xff] %v3839_v63  ;;  %4758 = vst [vmem:[#allocation47_spill] sm:$0xff] %v3841_v59  ;;  %v3856_v37 = vld [vmem:[#allocation8 + $0x70] sm:$0xff]  ;;  %v3858_v34 = vld [vmem:[#allocation8 + $0x78] sm:$0xff] }
  0xa6   :  { %4759 = vst [vmem:[#allocation48_spill] sm:$0xff] %v3843_v62  ;;  %4761 = vst [vmem:[#allocation49_spill] sm:$0xff] %v3856_v37  ;;  %v3860_v29 = vld [vmem:[#allocation8 + $0x170] sm:$0xff]  ;;  %v3874_v2 = vld [vmem:[#allocation8 + $0x178] sm:$0xff] }
  0xa7   :  { %4762 = vst [vmem:[#allocation50_spill] sm:$0xff] %v3858_v34  ;;  %4763 = vst [vmem:[#allocation51_spill] sm:$0xff] %v3860_v29  ;;  %v3876_v1 = vld [vmem:[#allocation5 + $0x8] sm:$0xff]  ;;  %v3878_v60 = vld [vmem:[#allocation5 + $0x38] sm:$0xff]  ;;  %v4774_v29 = vpack.c.bf16 %v3577_v13, %v3572_v12 }
  0xa8   :  { %4766 = vst [vmem:[#allocation52_spill] sm:$0xff] %v3874_v2  ;;  %4767 = vst [vmem:[#allocation53_spill] sm:$0xff] %v3876_v1  ;;  %v4769_v6 = vld [vmem:[#allocation16_spill] sm:$0xff]  ;;  %v4770_v7 = vld [vmem:[#allocation15_spill] sm:$0xff]  ;;  %v2091_v61 = vcombine.low %v3876_v1, %v3876_v1  ;;  %v2094_v0 = vcombine.high %v3876_v1, %v3876_v1  ;;  %v2097_v35 = vcombine.low %v3878_v60, %v3878_v60 }
  0xa9   :  { %4768 = vst [vmem:[#allocation54_spill] sm:$0xff] %v3878_v60  ;;  %v4771_v8 = vpack.c.bf16 %v4769_v6, %v4770_v7  ;;  %v3885_v4 = vld [vmem:[#allocation5 + $0x68] sm:$0xff]  ;;  %v3887_v5 = vld [vmem:[#allocation5 + $0x98] sm:$0xff]  ;;  %v2100_v6 = vcombine.high %v3878_v60, %v3878_v60  ;;  %2696 = vmatpush3.bf16.msra.mxu0 %v4774_v29  ;;  %v4778_v1 = vld [vmem:[#allocation18_spill] sm:$0xff] }
  0xaa   :  { %4772 = vst [vmem:[#allocation16_spill] sm:$0xff] %v3885_v4  ;;  %4773 = vst [vmem:[#allocation15_spill] sm:$0xff] %v3887_v5  ;;  %v2103_v7 = vcombine.low %v3885_v4, %v3885_v4  ;;  %v2109_v9 = vcombine.low %v3887_v5, %v3887_v5  ;;  %v2112_v2 = vcombine.high %v3887_v5, %v3887_v5  ;;  %v256_v37 = vsel %vm248_vm0, %v2091_v61, 0.0  ;;  %v4775_v59 = vld [vmem:[#allocation17_spill] sm:$0xff]  ;;  %v4781_v25 = vld [vmem:[#allocation20_spill] sm:$0xff] }
  0xab   :  { %2726 = vmatprep.subr.bf16.mxu1 %v4771_v8  ;;  %v2106_v8 = vcombine.high %v3885_v4, %v3885_v4  ;;  %v298_v34 = vsel %vm248_vm0, %v2094_v0, 0.0  ;;  %v340_v60 = vsel %vm248_vm0, %v2097_v35, 0.0  ;;  %v4776_v62 = vpack.c.bf16 %v3587_v15, %v4775_v59  ;;  %v4777_v4 = vld [vmem:[#allocation19_spill] sm:$0xff]  ;;  %v4780_v5 = vld [vmem:[#allocation21_spill] sm:$0xff]  ;;  %v4784_v50 = vld [vmem:[#allocation22_spill] sm:$0xff] }
  0xac   :  { %v4779_v26 = vpack.c.bf16 %v4777_v4, %v4778_v1  ;;  %v257_v63 = vrot.slane %v256_v37, 4  ;;  %v299_v12 = vrot.slane %v298_v34, 4  ;;  %v341_v13 = vrot.slane %v340_v60, 4  ;;  %v4783_v4 = vld [vmem:[#allocation23_spill] sm:$0xff] }
  0xad   :  { %2728 = vmatpush3.bf16.msra.mxu1 %v4776_v62  ;;  %v382_v29 = vsel %vm248_vm0, %v2100_v6, 0.0  ;;  %v4782_v61 = vpack.c.bf16 %v4780_v5, %v4781_v25  ;;  %v424_v35 = vsel %vm248_vm0, %v2103_v7, 0.0  ;;  %v466_v52 = vsel %vm248_vm0, %v2106_v8, 0.0  ;;  %v94_v25 = vld [vmem:[%s4664_s0 + $0x10] sm:$0xff]  ;;  %v4786_v8 = vld [vmem:[#allocation25_spill] sm:$0xff] }
  0xae   :  { %2698 = vmatprep.subr.bf16.mxu0 %v4779_v26  ;;  %v383_v0 = vrot.slane %v382_v29, 4  ;;  %v508_v15 = vsel %vm248_vm0, %v2109_v9, 0.0  ;;  %v258_v62 = vadd.f32 %v257_v63, %v256_v37  ;;  %v300_v59 = vadd.f32 %v299_v12, %v298_v34  ;;  %v4787_v9 = vld [vmem:[#allocation24_spill] sm:$0xff]  ;;  %v4789_v34 = vld [vmem:[#allocation27_spill] sm:$0xff]  ;;  %v4790_v63 = vld [vmem:[#allocation26_spill] sm:$0xff] }
  0xaf   :  { %2730 = vmatprep.subr.bf16.mxu1 %v4782_v61  ;;  %v342_v1 = vadd.f32 %v341_v13, %v340_v60  ;;  %v425_v26 = vrot.slane %v424_v35, 4  ;;  %v4785_v46 = vpack.c.bf16 %v4783_v4, %v4784_v50  ;;  %v467_v6 = vrot.slane %v466_v52, 4 }
  0xb0   :  { %v384_v5 = vadd.f32 %v383_v0, %v382_v29  ;;  %v509_v61 = vrot.slane %v508_v15, 4  ;;  %v550_v7 = vsel %vm248_vm0, %v2112_v2, 0.0  ;;  %v4788_v37 = vpack.c.bf16 %v4786_v8, %v4787_v9 }
  0xb1   :  { %2700 = vmatpush3.bf16.msra.mxu0 %v4785_v46  ;;  %v4791_v60 = vpack.c.bf16 %v4789_v34, %v4790_v63  ;;  %v96_v46 = vld [vmem:[%s4664_s0 + $0x20] sm:$0xff]  ;;  %v259_v50 = vrot.slane %v258_v62, 2  ;;  %v301_v12 = vrot.slane %v300_v59, 2  ;;  %v343_v13 = vrot.slane %v342_v1, 2 }
  0xb2   :  { %2732 = vmatpush3.bf16.msra.mxu1 %v4788_v37  ;;  %v426_v29 = vadd.f32 %v425_v26, %v424_v35  ;;  %v4792_v2 = vpack.c.bf16 %v3643_v31, %v3641_v30  ;;  %v385_v0 = vrot.slane %v384_v5, 2  ;;  %v468_v4 = vadd.f32 %v467_v6, %v466_v52  ;;  %v4794_v52 = vld [vmem:[#allocation29_spill] sm:$0xff] }
  0xb3   :  { %2734 = vmatprep.subr.bf16.mxu0 %v4791_v60  ;;  %v510_v8 = vadd.f32 %v509_v61, %v508_v15  ;;  %v551_v9 = vrot.slane %v550_v7, 4  ;;  %v260_v37 = vadd.f32 %v259_v50, %v258_v62  ;;  %v302_v34 = vadd.f32 %v301_v12, %v300_v59  ;;  %v4795_v15 = vld [vmem:[#allocation28_spill] sm:$0xff]  ;;  %v4798_v62 = vld [vmem:[#allocation30_spill] sm:$0xff] }
  0xb4   :  { %2766 = vmatprep.subr.bf16.mxu1 %v4792_v2  ;;  %1171 = vmatmul.mubr.f32.vlgmr.msra.gmra.mrb[4].mxu0 %v94_v25  ;;  %v344_v63 = vadd.f32 %v343_v13, %v342_v1  ;;  %v427_v60 = vrot.slane %v426_v29, 2  ;;  %v4793_v35 = vpack.c.bf16 %v3647_v33, %v3645_v32  ;;  %v386_v26 = vadd.f32 %v385_v0, %v384_v5  ;;  %v4797_v25 = vld [vmem:[#allocation31_spill] sm:$0xff] }
  0xb5   :  { %1241 = vmatmul.mubr.f32.vlgmr.msra.gmra.mrb[4].mxu1 %v96_v46  ;;  %v469_v40 = vrot.slane %v468_v4, 2  ;;  %v511_v30 = vrot.slane %v510_v8, 2  ;;  %v552_v31 = vadd.f32 %v551_v9, %v550_v7  ;;  %v4796_v6 = vpack.c.bf16 %v4794_v52, %v4795_v15 }
  0xb6   :  { %2736 = vmatpush3.bf16.msra.mxu0 %v4793_v35  ;;  %v4799_v59 = vpack.c.bf16 %v4797_v25, %v4798_v62  ;;  %v261_v1 = vrot.slane %v260_v37, 1  ;;  %v303_v61 = vrot.slane %v302_v34, 1  ;;  %v345_v46 = vrot.slane %v344_v63, 1  ;;  %v3969_v62 = vld [vmem:[#allocation5 + $0x48] sm:$0xff] }
  0xb7   :  { %2768 = vmatpush3.bf16.msra.mxu1 %v4796_v6  ;;  %v428_v50 = vadd.f32 %v427_v60, %v426_v29  ;;  %v4800_v32 = vpack.c.bf16 %v3667_v43, %v3665_v42  ;;  %v387_v33 = vrot.slane %v386_v26, 1  ;;  %v470_v5 = vadd.f32 %v469_v40, %v468_v4  ;;  %v3958_v6 = vld [vmem:[#allocation5 + $0x18] sm:$0xff]  ;;  %v4802_v42 = vld [vmem:[#allocation32_spill] sm:$0xff]  ;;  %v4804_v43 = vld [vmem:[#allocation34_spill] sm:$0xff] }
  0xb8   :  { %2738 = vmatprep.subr.bf16.mxu0 %v4799_v59  ;;  %v512_v7 = vadd.f32 %v511_v30, %v510_v8  ;;  %v553_v12 = vrot.slane %v552_v31, 2  ;;  %v262_v13 = vadd.f32 %v261_v1, %v260_v37  ;;  %v304_v2 = vadd.f32 %v303_v61, %v302_v34  ;;  %v4805_v4 = vld [vmem:[#allocation33_spill] sm:$0xff] }
  0xb9   :  { %2770 = vmatprep.subr.bf16.mxu1 %v4800_v32  ;;  %v346_v0 = vadd.f32 %v345_v46, %v344_v63  ;;  %v429_v9 = vrot.slane %v428_v50, 1  ;;  %v4801_v35 = vpack.c.bf16 %v3671_v45, %v3669_v44  ;;  %v388_v52 = vadd.f32 %v387_v33, %v386_v26  ;;  %v3972_v1 = vld [vmem:[#allocation5 + $0x78] sm:$0xff] }
  0xba   :  { %v471_v29 = vrot.slane %v470_v5, 1  ;;  %v513_v60 = vrot.slane %v512_v7, 1  ;;  %v554_v15 = vadd.f32 %v553_v12, %v552_v31  ;;  %v4803_v40 = vpack.c.bf16 %v3675_v47, %v4802_v42  ;;  %v4810_v12 = vld [vmem:[#allocation35_spill] sm:$0xff] }
  0xbb   :  { %2740 = vmatpush3.bf16.msra.mxu0 %v4801_v35  ;;  %v4806_v8 = vpack.c.bf16 %v4804_v43, %v4805_v4  ;;  %v430_v37 = vadd.f32 %v429_v9, %v428_v50  ;;  %v587_v34 = vmul.f32 0.25, %v262_v13  ;;  %v593_v63 = vmul.f32 0.25, %v304_v2 }
  0xbc   :  { %2772 = vmatpush3.bf16.msra.mxu1 %v4803_v40  ;;  %v599_v30 = vmul.f32 0.25, %v346_v0  ;;  %v4807_v44 = vpack.c.bf16 %v3691_v55, %v3689_v54  ;;  %v472_v45 = vadd.f32 %v471_v29, %v470_v5  ;;  %v514_v26 = vadd.f32 %v513_v60, %v512_v7  ;;  %v3982_v5 = vld [vmem:[#allocation5 + $0xa8] sm:$0xff] }
  0xbd   :  { %2742 = vmatprep.subr.bf16.mxu0 %v4806_v8  ;;  %v555_v31 = vrot.slane %v554_v15, 1  ;;  %v605_v25 = vmul.f32 0.25, %v388_v52  ;;  %v611_v47 = vmul.f32 0.25, %v430_v37  ;;  %v1404_v59 = vsel %vm1390_vm1, %v593_v63, %v587_v34 }
  0xbe   :  { %2774 = vmatprep.subr.bf16.mxu1 %v4807_v44  ;;  %v2092_v61 = vcombine.low %v3958_v6, %v3958_v6  ;;  %v2095_v46 = vcombine.high %v3958_v6, %v3958_v6  ;;  %v4808_v54 = vpack.c.bf16 %v3695_v57, %v3693_v56  ;;  %v617_v50 = vmul.f32 0.25, %v472_v45 }
  0xbf   :  { %v556_v55 = vadd.f32 %v555_v31, %v554_v15  ;;  %v623_v32 = vmul.f32 0.25, %v514_v26  ;;  %v1405_v33 = vsel %vm1392_vm2, %v599_v30, %v1404_v59  ;;  %v4809_v7 = vpack.c.bf16 %v3699_v3, %v3697_v58 }
  0xc0   :  { %2744 = vmatpush3.bf16.msra.mxu0 %v4808_v54  ;;  %v4811_v13 = vpack.c.bf16 %v3703_v51, %v4810_v12  ;;  %v1406_v2 = vsel %vm1394_vm3, %v605_v25, %v1405_v33  ;;  %v2098_v56 = vcombine.low %v3969_v62, %v3969_v62  ;;  %v2101_v57 = vcombine.high %v3969_v62, %v3969_v62 }
  0xc1   :  { %2776 = vmatpush3.bf16.msra.mxu1 %v4809_v7  ;;  %v270_v0 = vsel %vm248_vm0, %v2092_v61, 0.0  ;;  %v4812_v9 = vpack.c.bf16 %v3715_v38, %v3713_v39  ;;  %v629_v58 = vmul.f32 0.25, %v556_v55  ;;  %v1407_v3 = vsel %vm1396_vm4, %v611_v47, %v1406_v2  ;;  %v4821_v2 = vld [vmem:[#allocation36_spill] sm:$0xff] }
  0xc2   :  { %2746 = vmatprep.subr.bf16.mxu0 %v4811_v13  ;;  %v2104_v51 = vcombine.low %v3972_v1, %v3972_v1  ;;  %v2107_v35 = vcombine.high %v3972_v1, %v3972_v1  ;;  %v1408_v52 = vsel %vm1398_vm5, %v617_v50, %v1407_v3  ;;  %v2110_v29 = vcombine.low %v3982_v5, %v3982_v5 }
  0xc3   :  { %2778 = vmatprep.subr.bf16.mxu1 %v4812_v9  ;;  %v2113_v60 = vcombine.high %v3982_v5, %v3982_v5  ;;  %v271_v15 = vrot.slane %v270_v0, 4  ;;  %v4813_v38 = vpack.c.bf16 %v3719_v11, %v3717_v10  ;;  %v1409_v39 = vsel %vm1400_vm6, %v623_v32, %v1408_v52  ;;  %v4823_v9 = vld [vmem:[#allocation38_spill] sm:$0xff] }
  0xc4   :  { %v312_v42 = vsel %vm248_vm0, %v2095_v46, 0.0  ;;  %v354_v40 = vsel %vm248_vm0, %v2098_v56, 0.0  ;;  %v396_v43 = vsel %vm248_vm0, %v2101_v57, 0.0  ;;  %v4814_v4 = vpack.c.bf16 %v3723_v53, %v3721_v20 }
  0xc5   :  { %2748 = vmatpush3.bf16.msra.mxu0 %v4813_v38  ;;  %v4815_v8 = vpack.c.bf16 %v3733_v19, %v3731_v18  ;;  %v4023_v37 = vsel %vm1402_vm7, %v629_v58, %v1409_v39  ;;  %v272_v10 = vadd.f32 %v271_v15, %v270_v0  ;;  %v313_v11 = vrot.slane %v312_v42, 4  ;;  %v4824_v58 = vld [vmem:[#allocation37_spill] sm:$0xff] }
  0xc6   :  { %2780 = vmatpush3.bf16.msra.mxu1 %v4814_v4  ;;  %v355_v34 = vrot.slane %v354_v40, 4  ;;  %v4816_v63 = vpack.c.bf16 %v3737_v17, %v3735_v16  ;;  %1509 = vmatprep.mubr.f32.mxu0 %v4023_v37  ;;  %v397_v30 = vrot.slane %v396_v43, 4  ;;  %v438_v53 = vsel %vm248_vm0, %v2104_v51, 0.0 }
  0xc7   :  { %2750 = vmatprep.subr.bf16.mxu0 %v4815_v8  ;;  %v480_v20 = vsel %vm248_vm0, %v2107_v35, 0.0  ;;  %v522_v18 = vsel %vm248_vm0, %v2110_v29, 0.0  ;;  %v273_v19 = vrot.slane %v272_v10, 2  ;;  %v314_v44 = vadd.f32 %v313_v11, %v312_v42  ;;  %v4827_v29 = vld [vmem:[#allocation40_spill] sm:$0xff]  ;;  %v4830_v11 = vld [vmem:[#allocation42_spill] sm:$0xff] }
  0xc8   :  { %2782 = vmatprep.subr.bf16.mxu1 %v4816_v63  ;;  %v356_v45 = vadd.f32 %v355_v34, %v354_v40  ;;  %v439_v26 = vrot.slane %v438_v53, 4  ;;  %v4817_v31 = vpack.c.bf16 %v3741_v27, %v3739_v14  ;;  %v398_v25 = vadd.f32 %v397_v30, %v396_v43  ;;  %v104_v40 = vld [vmem:[#allocation5] sm:$0xff] }
  0xc9   :  { %v481_v16 = vrot.slane %v480_v20, 4  ;;  %v523_v17 = vrot.slane %v522_v18, 4  ;;  %v564_v47 = vsel %vm248_vm0, %v2113_v60, 0.0  ;;  %v4818_v59 = vpack.c.bf16 %v3745_v41, %v3743_v28  ;;  %v4828_v60 = vld [vmem:[#allocation39_spill] sm:$0xff] }
  0xca   :  { %2752 = vmatpush3.bf16.msra.mxu0 %v4817_v31  ;;  %v4819_v61 = vpack.c.bf16 %v3757_v24, %v3755_v23  ;;  %v274_v46 = vadd.f32 %v273_v19, %v272_v10  ;;  %v315_v54 = vrot.slane %v314_v44, 2  ;;  %v357_v55 = vrot.slane %v356_v45, 2  ;;  %v4834_v19 = vld [vmem:[#allocation43_spill] sm:$0xff] }
  0xcb   :  { %2784 = vmatpush3.bf16.msra.mxu1 %v4818_v59  ;;  %v440_v50 = vadd.f32 %v439_v26, %v438_v53  ;;  %v4820_v14 = vpack.c.bf16 %v3761_v22, %v3759_v21  ;;  %v399_v27 = vrot.slane %v398_v25, 2  ;;  %v482_v32 = vadd.f32 %v481_v16, %v480_v20  ;;  %v110_v20 = vld [vmem:[#allocation5 + $0x30] sm:$0xff]  ;;  %v4837_v26 = vld [vmem:[#allocation45_spill] sm:$0xff] }
  0xcc   :  { %2754 = vmatprep.subr.bf16.mxu0 %v4819_v61  ;;  %v524_v33 = vadd.f32 %v523_v17, %v522_v18  ;;  %v565_v7 = vrot.slane %v564_v47, 4  ;;  %v275_v12 = vrot.slane %v274_v46, 1  ;;  %v316_v13 = vadd.f32 %v315_v54, %v314_v44  ;;  %v4833_v18 = vld [vmem:[#allocation44_spill] sm:$0xff] }
  0xcd   :  { %2786 = vmatprep.subr.bf16.mxu1 %v4820_v14  ;;  %v358_v41 = vadd.f32 %v357_v55, %v356_v45  ;;  %v441_v28 = vrot.slane %v440_v50, 2  ;;  %v4822_v23 = vpack.c.bf16 %v3773_v36, %v4821_v2  ;;  %v400_v24 = vadd.f32 %v399_v27, %v398_v25  ;;  %v4836_v45 = vld [vmem:[#allocation46_spill] sm:$0xff]  ;;  %v4840_v61 = vld [vmem:[#allocation48_spill] sm:$0xff] }
  0xce   :  { %v483_v56 = vrot.slane %v482_v32, 2  ;;  %v525_v57 = vrot.slane %v524_v33, 2  ;;  %v566_v0 = vadd.f32 %v565_v7, %v564_v47  ;;  %v4825_v21 = vpack.c.bf16 %v4823_v9, %v4824_v58  ;;  %v4839_v47 = vld [vmem:[#allocation53_spill] sm:$0xff]  ;;  %v4844_v2 = vld [vmem:[#allocation50_spill] sm:$0xff]  ;;  %v4847_v58 = vld [vmem:[#allocation52_spill] sm:$0xff] }
  0xcf   :  { %2756 = vmatpush3.bf16.msra.mxu0 %v4822_v23  ;;  %v4826_v22 = vpack.c.bf16 %v3792_v49, %v3790_v48  ;;  %v276_v3 = vadd.f32 %v275_v12, %v274_v46  ;;  %v317_v51 = vrot.slane %v316_v13, 1  ;;  %v359_v35 = vrot.slane %v358_v41, 1  ;;  %v4831_v48 = vld [vmem:[#allocation41_spill] sm:$0xff]  ;;  %v4841_v46 = vld [vmem:[#allocation47_spill] sm:$0xff]  ;;  %v122_v12 = vld [vmem:[#allocation5 + $0x90] sm:$0xff] }
  0xd0   :  { %2788 = vmatpush3.bf16.msra.mxu1 %v4825_v21  ;;  %v442_v52 = vadd.f32 %v441_v28, %v440_v50  ;;  %v4829_v36 = vpack.c.bf16 %v4827_v29, %v4828_v60  ;;  %v401_v15 = vrot.slane %v400_v24, 1  ;;  %v484_v38 = vadd.f32 %v483_v56, %v482_v32  ;;  %v116_v32 = vld [vmem:[#allocation5 + $0x60] sm:$0xff]  ;;  %v4845_v23 = vld [vmem:[#allocation49_spill] sm:$0xff]  ;;  %v4848_v21 = vld [vmem:[#allocation51_spill] sm:$0xff] }
  0xd1   :  { %2758 = vmatprep.subr.bf16.mxu0 %v4826_v22  ;;  %v526_v39 = vadd.f32 %v525_v57, %v524_v33  ;;  %v567_v42 = vrot.slane %v566_v0, 2  ;;  %v318_v43 = vadd.f32 %v317_v51, %v316_v13  ;;  %v360_v4 = vadd.f32 %v359_v35, %v358_v41  ;;  %v4843_v41 = vld [vmem:[#allocation54_spill] sm:$0xff]  ;;  %v4850_v35 = vld [vmem:[#allocation16_spill] sm:$0xff] }
  0xd2   :  { %2790 = vmatprep.subr.bf16.mxu1 %v4829_v36  ;;  %v443_v8 = vrot.slane %v442_v52, 1  ;;  %v589_v10 = vmul.f32 0.25, %v276_v3  ;;  %v4832_v49 = vpack.c.bf16 %v4830_v11, %v4831_v48  ;;  %v402_v34 = vadd.f32 %v401_v15, %v400_v24  ;;  %v4851_v15 = vld [vmem:[#allocation15_spill] sm:$0xff] }
  0xd3   :  { %v485_v63 = vrot.slane %v484_v38, 1  ;;  %v527_v30 = vrot.slane %v526_v39, 1  ;;  %v568_v53 = vadd.f32 %v567_v42, %v566_v0  ;;  %v4835_v44 = vpack.c.bf16 %v4833_v18, %v4834_v19 }
  0xd4   :  { %2760 = vmatpush3.bf16.msra.mxu0 %v4832_v49  ;;  %v4838_v31 = vpack.c.bf16 %v4836_v45, %v4837_v26  ;;  %v444_v25 = vadd.f32 %v443_v8, %v442_v52  ;;  %v595_v16 = vmul.f32 0.25, %v318_v43  ;;  %v601_v17 = vmul.f32 0.25, %v360_v4 }
  0xd5   :  { %2792 = vmatpush3.bf16.msra.mxu1 %v4835_v44  ;;  %v152_v59 = vcombine.low %v104_v40, %v4839_v47  ;;  %v4842_v54 = vpack.c.bf16 %v4840_v61, %v4841_v46  ;;  %v486_v55 = vadd.f32 %v485_v63, %v484_v38  ;;  %v528_v50 = vadd.f32 %v527_v30, %v526_v39 }
  0xd6   :  { %2762 = vmatprep.subr.bf16.mxu0 %v4838_v31  ;;  %v569_v14 = vrot.slane %v568_v53, 1  ;;  %v607_v27 = vmul.f32 0.25, %v402_v34  ;;  %v613_v33 = vmul.f32 0.25, %v444_v25  ;;  %v1418_v7 = vsel %vm1390_vm1, %v595_v16, %v589_v10 }
  0xd7   :  { %2794 = vmatprep.subr.bf16.mxu1 %v4842_v54  ;;  %v153_v13 = vcombine.high %v104_v40, %v4839_v47  ;;  %v158_v28 = vcombine.low %v110_v20, %v4843_v41  ;;  %v4846_v24 = vpack.c.bf16 %v4844_v2, %v4845_v23  ;;  %v619_v57 = vmul.f32 0.25, %v486_v55 }
  0xd8   :  { %v570_v56 = vadd.f32 %v569_v14, %v568_v53  ;;  %v625_v0 = vmul.f32 0.25, %v528_v50  ;;  %v1419_v9 = vsel %vm1392_vm2, %v601_v17, %v1418_v7  ;;  %v4849_v22 = vpack.c.bf16 %v4847_v58, %v4848_v21 }
  0xd9   :  { %2764 = vmatpush3.bf16.msra.mxu0 %v4846_v24  ;;  %v1420_v3 = vsel %vm1394_vm3, %v607_v27, %v1419_v9  ;;  %v159_v51 = vcombine.high %v110_v20, %v4843_v41  ;;  %v164_v52 = vcombine.low %v116_v32, %v4850_v35  ;;  %v165_v29 = vcombine.high %v116_v32, %v4850_v35 }
  0xda   :  { %2796 = vmatpush3.bf16.msra.mxu1 %v4849_v22  ;;  %v631_v60 = vmul.f32 0.25, %v570_v56  ;;  %v1421_v36 = vsel %vm1396_vm4, %v613_v33, %v1420_v3  ;;  %v170_v38 = vcombine.low %v122_v12, %v4851_v15  ;;  %v171_v39 = vcombine.high %v122_v12, %v4851_v15 }
  0xdb   :  { %v1422_v42 = vsel %vm1398_vm5, %v619_v57, %v1421_v36  ;;  %v249_v40 = vsel %vm248_vm0, %v152_v59, 0.0  ;;  %v291_v43 = vsel %vm248_vm0, %v153_v13, 0.0  ;;  %v333_v4 = vsel %vm248_vm0, %v158_v28, 0.0 }
  0xdc   :  { %v1423_v8 = vsel %vm1400_vm6, %v625_v0, %v1422_v42  ;;  %v250_v10 = vrot.slane %v249_v40, 4  ;;  %v292_v11 = vrot.slane %v291_v43, 4  ;;  %v334_v48 = vrot.slane %v333_v4, 4 }
  0xdd   :  { %v4093_v49 = vsel %vm1402_vm7, %v631_v60, %v1423_v8  ;;  %v375_v34 = vsel %vm248_vm0, %v159_v51, 0.0  ;;  %v417_v63 = vsel %vm248_vm0, %v164_v52, 0.0  ;;  %v459_v30 = vsel %vm248_vm0, %v165_v29, 0.0  ;;  %v106_v52 = vld [vmem:[#allocation5 + $0x10] sm:$0xff] }
  0xde   :  { %1579 = vmatprep.mubr.f32.mxu1 %v4093_v49  ;;  %v251_v53 = vadd.f32 %v250_v10, %v249_v40  ;;  %v293_v20 = vadd.f32 %v292_v11, %v291_v43  ;;  %v335_v18 = vadd.f32 %v334_v48, %v333_v4  ;;  %v376_v19 = vrot.slane %v375_v34, 4  ;;  %v112_v43 = vld [vmem:[#allocation5 + $0x40] sm:$0xff]  ;;  %v118_v4 = vld [vmem:[#allocation5 + $0x70] sm:$0xff] }
  0xdf   :  { %v418_v44 = vrot.slane %v417_v63, 4  ;;  %v460_v45 = vrot.slane %v459_v30, 4  ;;  %v501_v26 = vsel %vm248_vm0, %v170_v38, 0.0  ;;  %v543_v31 = vsel %vm248_vm0, %v171_v39, 0.0 }
  0xe0   :  { %v252_v25 = vrot.slane %v251_v53, 2  ;;  %v294_v16 = vrot.slane %v293_v20, 2  ;;  %v336_v17 = vrot.slane %v335_v18, 2  ;;  %v377_v47 = vadd.f32 %v376_v19, %v375_v34 }
  0xe1   :  { %v419_v59 = vadd.f32 %v418_v44, %v417_v63  ;;  %v461_v61 = vadd.f32 %v460_v45, %v459_v30  ;;  %v502_v46 = vrot.slane %v501_v26, 4  ;;  %v544_v54 = vrot.slane %v543_v31, 4 }
  0xe2   :  { %v253_v55 = vadd.f32 %v252_v25, %v251_v53  ;;  %v295_v50 = vadd.f32 %v294_v16, %v293_v20  ;;  %v337_v14 = vadd.f32 %v336_v17, %v335_v18  ;;  %v378_v27 = vrot.slane %v377_v47, 2  ;;  %v124_v20 = vld [vmem:[#allocation5 + $0xa0] sm:$0xff] }
  0xe3   :  { %v420_v32 = vrot.slane %v419_v59, 2  ;;  %v462_v33 = vrot.slane %v461_v61, 2  ;;  %v503_v7 = vadd.f32 %v502_v46, %v501_v26  ;;  %v545_v12 = vadd.f32 %v544_v54, %v543_v31 }
  0xe4   :  { %v254_v13 = vrot.slane %v253_v55, 1  ;;  %v296_v41 = vrot.slane %v295_v50, 1  ;;  %v338_v28 = vrot.slane %v337_v14, 1  ;;  %v379_v2 = vadd.f32 %v378_v27, %v377_v47 }
  0xe5   :  { %v421_v23 = vadd.f32 %v420_v32, %v419_v59  ;;  %v463_v24 = vadd.f32 %v462_v33, %v461_v61  ;;  %v504_v56 = vrot.slane %v503_v7, 2  ;;  %v546_v57 = vrot.slane %v545_v12, 2 }
  0xe6   :  { %v255_v0 = vadd.f32 %v254_v13, %v253_v55  ;;  %v297_v9 = vadd.f32 %v296_v41, %v295_v50  ;;  %v339_v58 = vadd.f32 %v338_v28, %v337_v14  ;;  %v380_v21 = vrot.slane %v379_v2, 1 }
  0xe7   :  { %v422_v22 = vrot.slane %v421_v23, 1  ;;  %v464_v3 = vrot.slane %v463_v24, 1  ;;  %v505_v51 = vadd.f32 %v504_v56, %v503_v7  ;;  %v547_v35 = vadd.f32 %v546_v57, %v545_v12 }
  0xe8   :  { %v381_v29 = vadd.f32 %v380_v21, %v379_v2  ;;  %v586_v60 = vmul.f32 0.25, %v255_v0  ;;  %v592_v36 = vmul.f32 0.25, %v297_v9  ;;  %v598_v15 = vmul.f32 0.25, %v339_v58 }
  0xe9   :  { %v423_v38 = vadd.f32 %v422_v22, %v421_v23  ;;  %v465_v39 = vadd.f32 %v464_v3, %v463_v24  ;;  %v506_v42 = vrot.slane %v505_v51, 1  ;;  %v548_v40 = vrot.slane %v547_v35, 1 }
  0xea   :  { %v604_v8 = vmul.f32 0.25, %v381_v29  ;;  %v1391_v10 = vsel %vm1390_vm1, %v592_v36, %v586_v60  ;;  %v154_v11 = vcombine.low %v106_v52, %v3958_v6  ;;  %v155_v48 = vcombine.high %v106_v52, %v3958_v6 }
  0xeb   :  { %v507_v34 = vadd.f32 %v506_v42, %v505_v51  ;;  %v549_v63 = vadd.f32 %v548_v40, %v547_v35  ;;  %v610_v30 = vmul.f32 0.25, %v423_v38  ;;  %v616_v53 = vmul.f32 0.25, %v465_v39 }
  0xec   :  { %v1393_v18 = vsel %vm1392_vm2, %v598_v15, %v1391_v10  ;;  %v160_v19 = vcombine.low %v112_v43, %v3969_v62  ;;  %v161_v44 = vcombine.high %v112_v43, %v3969_v62  ;;  %v166_v45 = vcombine.low %v118_v4, %v3972_v1 }
  0xed   :  { %v622_v26 = vmul.f32 0.25, %v507_v34  ;;  %v628_v31 = vmul.f32 0.25, %v549_v63  ;;  %v1395_v25 = vsel %vm1394_vm3, %v604_v8, %v1393_v18  ;;  %v167_v16 = vcombine.high %v118_v4, %v3972_v1  ;;  %v1327_v34 = vld [vmem:[#allocation8 + $0x288] sm:$0xff]  ;;  %v1310_v63 = vld [vmem:[#allocation8 + $0x200] sm:$0xff] }
  0xee   :  { %v1397_v6 = vsel %vm1396_vm4, %v610_v30, %v1395_v25  ;;  %v172_v17 = vcombine.low %v124_v20, %v3982_v5  ;;  %v173_v47 = vcombine.high %v124_v20, %v3982_v5  ;;  %v263_v59 = vsel %vm248_vm0, %v154_v11, 0.0 }
  0xef   :  { %v1399_v61 = vsel %vm1398_vm5, %v616_v53, %v1397_v6  ;;  %v264_v46 = vrot.slane %v263_v59, 4  ;;  %v305_v62 = vsel %vm248_vm0, %v155_v48, 0.0  ;;  %v347_v54 = vsel %vm248_vm0, %v160_v19, 0.0  ;;  %v1326_v48 = vld [vmem:[#allocation8 + $0x280] sm:$0xff]  ;;  %v1311_v19 = vld [vmem:[#allocation8 + $0x208] sm:$0xff]  ;;  %v4127_v6 = vld [vmem:[#allocation8 + $0x210] sm:$0xff] }
  0xf0   :  { %v1401_v55 = vsel %vm1400_vm6, %v622_v26, %v1399_v61  ;;  %v306_v50 = vrot.slane %v305_v62, 4  ;;  %v348_v14 = vrot.slane %v347_v54, 4  ;;  %v389_v1 = vsel %vm248_vm0, %v161_v44, 0.0  ;;  %v1328_v44 = vld [vmem:[#allocation8 + $0x290] sm:$0xff] }
  0xf1   :  { %v4120_v27 = vsel %vm1402_vm7, %v628_v31, %v1401_v55  ;;  %v265_v32 = vadd.f32 %v264_v46, %v263_v59  ;;  %v390_v5 = vrot.slane %v389_v1, 4  ;;  %v431_v33 = vsel %vm248_vm0, %v166_v45, 0.0  ;;  %v1329_v45 = vld [vmem:[#allocation8 + $0x298] sm:$0xff]  ;;  %v4133_v59 = vld [vmem:[#allocation8 + $0x2a8] sm:$0xff]  ;;  %v4135_v55 = vld [vmem:[#allocation8 + $0x220] sm:$0xff] }
  0xf2   :  { %1510 = vmatmul.mubr.f32.vlgmr.msra.gmra.mrb[6].mxu0 %v4120_v27  ;;  %v307_v7 = vadd.f32 %v306_v50, %v305_v62  ;;  %v349_v12 = vadd.f32 %v348_v14, %v347_v54  ;;  %v432_v13 = vrot.slane %v431_v33, 4  ;;  %v473_v41 = vsel %vm248_vm0, %v167_v16, 0.0  ;;  %v4137_v50 = vld [vmem:[#allocation8 + $0x228] sm:$0xff]  ;;  %v4139_v14 = vld [vmem:[#allocation8 + $0x2b0] sm:$0xff] }
  0xf3   :  { %v266_v28 = vrot.slane %v265_v32, 2  ;;  %v391_v2 = vadd.f32 %v390_v5, %v389_v1  ;;  %v474_v23 = vrot.slane %v473_v41, 4  ;;  %v515_v24 = vsel %vm248_vm0, %v172_v17, 0.0  ;;  %v4129_v17 = vld [vmem:[#allocation8 + $0x218] sm:$0xff] }
  0xf4   :  { %v308_v56 = vrot.slane %v307_v7, 2  ;;  %v350_v57 = vrot.slane %v349_v12, 2  ;;  %v433_v0 = vadd.f32 %v432_v13, %v431_v33  ;;  %v516_v9 = vrot.slane %v515_v24, 4  ;;  %v4141_v1 = vld [vmem:[#allocation8 + $0x2b8] sm:$0xff] }
  0xf5   :  { %v267_v58 = vadd.f32 %v266_v28, %v265_v32  ;;  %v392_v21 = vrot.slane %v391_v2, 2  ;;  %v475_v22 = vadd.f32 %v474_v23, %v473_v41  ;;  %v557_v3 = vsel %vm248_vm0, %v173_v47, 0.0  ;;  %v4131_v47 = vld [vmem:[#allocation8 + $0x2a0] sm:$0xff]  ;;  %v4145_v13 = vld [vmem:[#allocation8 + $0x238] sm:$0xff]  ;;  %v4149_v28 = vld [vmem:[#allocation8 + $0x2c8] sm:$0xff] }
  0xf6   :  { %v309_v51 = vadd.f32 %v308_v56, %v307_v7  ;;  %v351_v35 = vadd.f32 %v350_v57, %v349_v12  ;;  %v434_v52 = vrot.slane %v433_v0, 2  ;;  %v517_v29 = vadd.f32 %v516_v9, %v515_v24  ;;  %v4143_v12 = vld [vmem:[#allocation8 + $0x230] sm:$0xff]  ;;  %v4147_v41 = vld [vmem:[#allocation8 + $0x2c0] sm:$0xff]  ;;  %v4153_v23 = vld [vmem:[#allocation8 + $0x248] sm:$0xff] }
  0xf7   :  { %v268_v60 = vrot.slane %v267_v58, 1  ;;  %v393_v36 = vadd.f32 %v392_v21, %v391_v2  ;;  %v476_v15 = vrot.slane %v475_v22, 2  ;;  %v558_v38 = vrot.slane %v557_v3, 4  ;;  %v4151_v2 = vld [vmem:[#allocation8 + $0x240] sm:$0xff]  ;;  %v4156_v9 = vld [vmem:[#allocation8 + $0x2d0] sm:$0xff] }
  0xf8   :  { %v310_v39 = vrot.slane %v309_v51, 1  ;;  %v352_v42 = vrot.slane %v351_v35, 1  ;;  %v435_v40 = vadd.f32 %v434_v52, %v433_v0  ;;  %v518_v43 = vrot.slane %v517_v29, 2  ;;  %v4160_v21 = vld [vmem:[#allocation8 + $0x250] sm:$0xff]  ;;  %v4163_v52 = vld [vmem:[#allocation8 + $0x258] sm:$0xff] }
  0xf9   :  { %v269_v4 = vadd.f32 %v268_v60, %v267_v58  ;;  %v394_v8 = vrot.slane %v393_v36, 1  ;;  %v477_v10 = vadd.f32 %v476_v15, %v475_v22  ;;  %v559_v11 = vadd.f32 %v558_v38, %v557_v3  ;;  %v4158_v58 = vld [vmem:[#allocation8 + $0x2d8] sm:$0xff]  ;;  %v4167_v60 = vld [vmem:[#allocation8 + $0x2e8] sm:$0xff] }
  0xfa   :  { %v311_v30 = vadd.f32 %v310_v39, %v309_v51  ;;  %v353_v53 = vadd.f32 %v352_v42, %v351_v35  ;;  %v436_v20 = vrot.slane %v435_v40, 1  ;;  %v519_v18 = vadd.f32 %v518_v43, %v517_v29  ;;  %v4165_v29 = vld [vmem:[#allocation8 + $0x2e0] sm:$0xff]  ;;  %v4178_v43 = vld [vmem:[#allocation8 + $0x2f0] sm:$0xff] }
  0xfb   :  { %v395_v26 = vadd.f32 %v394_v8, %v393_v36  ;;  %v478_v31 = vrot.slane %v477_v10, 1  ;;  %v560_v25 = vrot.slane %v559_v11, 2  ;;  %v588_v16 = vmul.f32 0.25, %v269_v4  ;;  %v4174_v42 = vld [vmem:[#allocation8 + $0x260] sm:$0xff] }
  0xfc   :  { %v437_v61 = vadd.f32 %v436_v20, %v435_v40  ;;  %v520_v46 = vrot.slane %v519_v18, 1  ;;  %v594_v62 = vmul.f32 0.25, %v311_v30  ;;  %v600_v54 = vmul.f32 0.25, %v353_v53  ;;  %v4176_v40 = vld [vmem:[#allocation8 + $0x268] sm:$0xff] }
  0xfd   :  { %v479_v32 = vadd.f32 %v478_v31, %v477_v10  ;;  %v561_v5 = vadd.f32 %v560_v25, %v559_v11  ;;  %v606_v33 = vmul.f32 0.25, %v395_v26  ;;  %v2797_v7 = vpack.c.bf16 %v1327_v34, %v1326_v48  ;;  %v4185_v48 = vld [vmem:[#allocation8 + $0x2f8] sm:$0xff]  ;;  %v4187_v34 = vld [vmem:[#allocation8 + $0x270] sm:$0xff] }
  0xfe   :  { %v521_v24 = vadd.f32 %v520_v46, %v519_v18  ;;  %v612_v56 = vmul.f32 0.25, %v437_v61  ;;  %v1411_v57 = vsel %vm1390_vm1, %v594_v62, %v588_v16  ;;  %v2799_v0 = vpack.c.bf16 %v1311_v19, %v1310_v63  ;;  %v4189_v63 = vld [vmem:[#allocation8 + $0x278] sm:$0xff]  ;;  %v4198_v19 = vld [vmem:[#allocation5 + $0x28] sm:$0xff] }
  0xff   :  { %v562_v22 = vrot.slane %v561_v5, 1  ;;  %v618_v3 = vmul.f32 0.25, %v479_v32  ;;  %v1412_v51 = vsel %vm1392_vm2, %v600_v54, %v1411_v57  ;;  %2798 = vmatprep.subr.bf16.mxu0 %v2797_v7  ;;  %v2801_v35 = vpack.c.bf16 %v1329_v45, %v1328_v44  ;;  %v4200_v44 = vld [vmem:[#allocation5 + $0x58] sm:$0xff]  ;;  %v4207_v16 = vld [vmem:[#allocation5 + $0x88] sm:$0xff] }
 0x100   :  { %v624_v36 = vmul.f32 0.25, %v521_v24  ;;  %v1413_v15 = vsel %vm1394_vm3, %v606_v33, %v1412_v51  ;;  %2800 = vmatpush3.bf16.msra.mxu0 %v2799_v0  ;;  %v2803_v38 = vpack.c.bf16 %v4129_v17, %v4127_v6  ;;  %v2805_v39 = vpack.c.bf16 %v4133_v59, %v4131_v47  ;;  %v4209_v6 = vld [vmem:[#allocation5 + $0xb8] sm:$0xff] }
 0x101   :  { %v563_v4 = vadd.f32 %v562_v22, %v561_v5  ;;  %v1414_v8 = vsel %vm1396_vm4, %v612_v56, %v1413_v15  ;;  %2802 = vmatprep.subr.bf16.mxu0 %v2801_v35  ;;  %v2807_v10 = vpack.c.bf16 %v4137_v50, %v4135_v55  ;;  %v2809_v11 = vpack.c.bf16 %v4141_v1, %v4139_v14 }
 0x102   :  { %v1415_v30 = vsel %vm1398_vm5, %v618_v3, %v1414_v8  ;;  %v2811_v53 = vpack.c.bf16 %v4145_v13, %v4143_v12  ;;  %v2813_v20 = vpack.c.bf16 %v4149_v28, %v4147_v41  ;;  %v2815_v18 = vpack.c.bf16 %v4153_v23, %v4151_v2 }
 0x103   :  { %v630_v45 = vmul.f32 0.25, %v563_v4  ;;  %v1416_v26 = vsel %vm1400_vm6, %v624_v36, %v1415_v30  ;;  %v2817_v31 = vpack.c.bf16 %v4158_v58, %v4156_v9  ;;  %v2819_v25 = vpack.c.bf16 %v4163_v52, %v4160_v21 }
 0x104   :  { %2804 = vmatpush3.bf16.msra.mxu0 %v2803_v38  ;;  %v2821_v17 = vpack.c.bf16 %v4167_v60, %v4165_v29  ;;  %v2823_v47 = vpack.c.bf16 %v4176_v40, %v4174_v42  ;;  %v2825_v59 = vpack.c.bf16 %v4185_v48, %v4178_v43  ;;  %v2827_v61 = vpack.c.bf16 %v4189_v63, %v4187_v34 }
 0x105   :  { %v4220_v46 = vsel %vm1402_vm7, %v630_v45, %v1416_v26  ;;  %2806 = vmatprep.subr.bf16.mxu0 %v2805_v39  ;;  %v2093_v62 = vcombine.low %v4198_v19, %v4198_v19  ;;  %v2096_v54 = vcombine.high %v4198_v19, %v4198_v19  ;;  %v2099_v55 = vcombine.low %v4200_v44, %v4200_v44 }
 0x106   :  { %1580 = vmatmul.mubr.f32.vlgmr.msra.gmra.mrb[6].mxu1 %v4220_v46  ;;  %v2102_v50 = vcombine.high %v4200_v44, %v4200_v44  ;;  %v2105_v14 = vcombine.low %v4207_v16, %v4207_v16  ;;  %v2108_v1 = vcombine.high %v4207_v16, %v4207_v16  ;;  %v2111_v32 = vcombine.low %v4209_v6, %v4209_v6 }
 0x107   :  { %v2114_v5 = vcombine.high %v4209_v6, %v4209_v6  ;;  %v284_v33 = vsel %vm248_vm0, %v2093_v62, 0.0  ;;  %v326_v7 = vsel %vm248_vm0, %v2096_v54, 0.0  ;;  %v368_v12 = vsel %vm248_vm0, %v2099_v55, 0.0 }
 0x108   :  { %2808 = vmatpush3.bf16.msra.mxu0 %v2807_v10  ;;  %v285_v13 = vrot.slane %v284_v33, 4  ;;  %v327_v41 = vrot.slane %v326_v7, 4  ;;  %v369_v28 = vrot.slane %v368_v12, 4  ;;  %v410_v24 = vsel %vm248_vm0, %v2102_v50, 0.0 }
 0x109   :  { %2810 = vmatprep.subr.bf16.mxu0 %v2809_v11  ;;  %v411_v56 = vrot.slane %v410_v24, 4  ;;  %v452_v57 = vsel %vm248_vm0, %v2105_v14, 0.0  ;;  %v494_v0 = vsel %vm248_vm0, %v2108_v1, 0.0  ;;  %v536_v22 = vsel %vm248_vm0, %v2111_v32, 0.0 }
 0x10a   :  { %v286_v3 = vadd.f32 %v285_v13, %v284_v33  ;;  %v328_v51 = vadd.f32 %v327_v41, %v326_v7  ;;  %v370_v35 = vadd.f32 %v369_v28, %v368_v12  ;;  %v453_v36 = vrot.slane %v452_v57, 4 }
 0x10b   :  { %v412_v15 = vadd.f32 %v411_v56, %v410_v24  ;;  %v495_v38 = vrot.slane %v494_v0, 4  ;;  %v537_v39 = vrot.slane %v536_v22, 4  ;;  %v578_v4 = vsel %vm248_vm0, %v2114_v5, 0.0 }
 0x10c   :  { %2812 = vmatpush3.bf16.msra.mxu0 %v2811_v53  ;;  %v287_v8 = vrot.slane %v286_v3, 2  ;;  %v329_v10 = vrot.slane %v328_v51, 2  ;;  %v371_v11 = vrot.slane %v370_v35, 2  ;;  %v454_v30 = vadd.f32 %v453_v36, %v452_v57 }
 0x10d   :  { %2814 = vmatprep.subr.bf16.mxu0 %v2813_v20  ;;  %v413_v45 = vrot.slane %v412_v15, 2  ;;  %v496_v26 = vadd.f32 %v495_v38, %v494_v0  ;;  %v538_v62 = vadd.f32 %v537_v39, %v536_v22  ;;  %v579_v54 = vrot.slane %v578_v4, 4 }
 0x10e   :  { %v288_v55 = vadd.f32 %v287_v8, %v286_v3  ;;  %v330_v50 = vadd.f32 %v329_v10, %v328_v51  ;;  %v372_v14 = vadd.f32 %v371_v11, %v370_v35  ;;  %v455_v1 = vrot.slane %v454_v30, 2  ;;  %v114_v8 = vld [vmem:[#allocation5 + $0x50] sm:$0xff]  ;;  %v120_v10 = vld [vmem:[#allocation5 + $0x80] sm:$0xff] }
 0x10f   :  { %v414_v32 = vadd.f32 %v413_v45, %v412_v15  ;;  %v497_v33 = vrot.slane %v496_v26, 2  ;;  %v539_v7 = vrot.slane %v538_v62, 2  ;;  %v580_v12 = vadd.f32 %v579_v54, %v578_v4  ;;  %v126_v45 = vld [vmem:[#allocation5 + $0xb0] sm:$0xff] }
 0x110   :  { %2816 = vmatpush3.bf16.msra.mxu0 %v2815_v18  ;;  %v289_v53 = vrot.slane %v288_v55, 1  ;;  %v331_v5 = vrot.slane %v330_v50, 1  ;;  %v373_v13 = vrot.slane %v372_v14, 1  ;;  %v456_v20 = vadd.f32 %v455_v1, %v454_v30  ;;  %v108_v18 = vld [vmem:[#allocation5 + $0x20] sm:$0xff] }
 0x111   :  { %2818 = vmatprep.subr.bf16.mxu0 %v2817_v31  ;;  %v415_v41 = vrot.slane %v414_v32, 1  ;;  %v498_v28 = vadd.f32 %v497_v33, %v496_v26  ;;  %v540_v24 = vadd.f32 %v539_v7, %v538_v62  ;;  %v581_v56 = vrot.slane %v580_v12, 2 }
 0x112   :  { %v290_v57 = vadd.f32 %v289_v53, %v288_v55  ;;  %v332_v0 = vadd.f32 %v331_v5, %v330_v50  ;;  %v374_v22 = vadd.f32 %v373_v13, %v372_v14  ;;  %v457_v3 = vrot.slane %v456_v20, 1 }
 0x113   :  { %v416_v51 = vadd.f32 %v415_v41, %v414_v32  ;;  %v499_v35 = vrot.slane %v498_v28, 1  ;;  %v541_v2 = vrot.slane %v540_v24, 1  ;;  %v582_v23 = vadd.f32 %v581_v56, %v580_v12 }
 0x114   :  { %2820 = vmatpush3.bf16.msra.mxu0 %v2819_v25  ;;  %v458_v36 = vadd.f32 %v457_v3, %v456_v20  ;;  %v591_v9 = vmul.f32 0.25, %v290_v57  ;;  %v597_v58 = vmul.f32 0.25, %v332_v0  ;;  %v603_v31 = vmul.f32 0.25, %v374_v22 }
 0x115   :  { %2822 = vmatprep.subr.bf16.mxu0 %v2821_v17  ;;  %v500_v15 = vadd.f32 %v499_v35, %v498_v28  ;;  %v542_v38 = vadd.f32 %v541_v2, %v540_v24  ;;  %v583_v39 = vrot.slane %v582_v23, 1  ;;  %v609_v4 = vmul.f32 0.25, %v416_v51 }
 0x116   :  { %v615_v11 = vmul.f32 0.25, %v458_v36  ;;  %v1432_v30 = vsel %vm1390_vm1, %v597_v58, %v591_v9  ;;  %v156_v21 = vcombine.low %v108_v18, %v4198_v19  ;;  %v157_v52 = vcombine.high %v108_v18, %v4198_v19 }
 0x117   :  { %v584_v25 = vadd.f32 %v583_v39, %v582_v23  ;;  %v621_v26 = vmul.f32 0.25, %v500_v15  ;;  %v627_v62 = vmul.f32 0.25, %v542_v38  ;;  %v1433_v29 = vsel %vm1392_vm2, %v603_v31, %v1432_v30 }
 0x118   :  { %2824 = vmatpush3.bf16.msra.mxu0 %v2823_v47  ;;  %v1434_v60 = vsel %vm1394_vm3, %v609_v4, %v1433_v29  ;;  %v162_v17 = vcombine.low %v114_v8, %v4200_v44  ;;  %v163_v54 = vcombine.high %v114_v8, %v4200_v44  ;;  %v168_v55 = vcombine.low %v120_v10, %v4207_v16 }
 0x119   :  { %2826 = vmatprep.subr.bf16.mxu0 %v2825_v59  ;;  %v633_v19 = vmul.f32 0.25, %v584_v25  ;;  %v1435_v50 = vsel %vm1396_vm4, %v615_v11, %v1434_v60  ;;  %v169_v14 = vcombine.high %v120_v10, %v4207_v16  ;;  %v174_v42 = vcombine.low %v126_v45, %v4209_v6 }
 0x11a   :  { %v1436_v40 = vsel %vm1398_vm5, %v621_v26, %v1435_v50  ;;  %v175_v47 = vcombine.high %v126_v45, %v4209_v6  ;;  %v277_v1 = vsel %vm248_vm0, %v156_v21, 0.0  ;;  %v319_v44 = vsel %vm248_vm0, %v157_v52, 0.0 }
 0x11b   :  { %v1437_v32 = vsel %vm1400_vm6, %v627_v62, %v1436_v40  ;;  %v278_v33 = vrot.slane %v277_v1, 4  ;;  %v320_v43 = vrot.slane %v319_v44, 4  ;;  %v361_v48 = vsel %vm248_vm0, %v162_v17, 0.0 }
 0x11c   :  { %2828 = vmatpush3.bf16.msra.mxu0 %v2827_v61  ;;  %v4286_v16 = vsel %vm1402_vm7, %v633_v19, %v1437_v32  ;;  %v362_v59 = vrot.slane %v361_v48, 4  ;;  %v403_v6 = vsel %vm248_vm0, %v163_v54, 0.0  ;;  %v445_v7 = vsel %vm248_vm0, %v168_v55, 0.0 }
 0x11d   :  { %1649 = vmatprep.mubr.f32.mxu0 %v4286_v16  ;;  %v279_v12 = vadd.f32 %v278_v33, %v277_v1  ;;  %v321_v53 = vadd.f32 %v320_v43, %v319_v44  ;;  %v404_v5 = vrot.slane %v403_v6, 4  ;;  %v446_v13 = vrot.slane %v445_v7, 4 }
 0x11e   :  { %v363_v20 = vadd.f32 %v362_v59, %v361_v48  ;;  %v487_v41 = vsel %vm248_vm0, %v169_v14, 0.0  ;;  %v529_v34 = vsel %vm248_vm0, %v174_v42, 0.0  ;;  %v571_v63 = vsel %vm248_vm0, %v175_v47, 0.0 }
 0x11f   :  { %v280_v61 = vrot.slane %v279_v12, 2  ;;  %v322_v28 = vrot.slane %v321_v53, 2  ;;  %v405_v24 = vadd.f32 %v404_v5, %v403_v6  ;;  %v447_v56 = vadd.f32 %v446_v13, %v445_v7 }
 0x120   :  { %v364_v57 = vrot.slane %v363_v20, 2  ;;  %v488_v0 = vrot.slane %v487_v41, 4  ;;  %v530_v22 = vrot.slane %v529_v34, 4  ;;  %v572_v3 = vrot.slane %v571_v63, 4 }
 0x121   :  { %v281_v51 = vadd.f32 %v280_v61, %v279_v12  ;;  %v323_v35 = vadd.f32 %v322_v28, %v321_v53  ;;  %v406_v2 = vrot.slane %v405_v24, 2  ;;  %v448_v23 = vrot.slane %v447_v56, 2 }
 0x122   :  { %v365_v18 = vadd.f32 %v364_v57, %v363_v20  ;;  %v489_v36 = vadd.f32 %v488_v0, %v487_v41  ;;  %v531_v9 = vadd.f32 %v530_v22, %v529_v34  ;;  %v573_v58 = vadd.f32 %v572_v3, %v571_v63 }
 0x123   :  { %v282_v31 = vrot.slane %v281_v51, 1  ;;  %v324_v15 = vrot.slane %v323_v35, 1  ;;  %v407_v38 = vadd.f32 %v406_v2, %v405_v24  ;;  %v449_v39 = vadd.f32 %v448_v23, %v447_v56 }
 0x124   :  { %v366_v4 = vrot.slane %v365_v18, 1  ;;  %v490_v8 = vrot.slane %v489_v36, 2  ;;  %v532_v10 = vrot.slane %v531_v9, 2  ;;  %v574_v11 = vrot.slane %v573_v58, 2 }
 0x125   :  { %v283_v30 = vadd.f32 %v282_v31, %v281_v51  ;;  %v325_v45 = vadd.f32 %v324_v15, %v323_v35  ;;  %v408_v21 = vrot.slane %v407_v38, 1  ;;  %v450_v52 = vrot.slane %v449_v39, 1 }
 0x126   :  { %v367_v25 = vadd.f32 %v366_v4, %v365_v18  ;;  %v491_v26 = vadd.f32 %v490_v8, %v489_v36  ;;  %v533_v62 = vadd.f32 %v532_v10, %v531_v9  ;;  %v575_v29 = vadd.f32 %v574_v11, %v573_v58 }
 0x127   :  { %v409_v60 = vadd.f32 %v408_v21, %v407_v38  ;;  %v451_v17 = vadd.f32 %v450_v52, %v449_v39  ;;  %v590_v54 = vmul.f32 0.25, %v283_v30  ;;  %v596_v55 = vmul.f32 0.25, %v325_v45 }
 0x128   :  { %v492_v19 = vrot.slane %v491_v26, 1  ;;  %v534_v50 = vrot.slane %v533_v62, 1  ;;  %v576_v14 = vrot.slane %v575_v29, 1  ;;  %v602_v42 = vmul.f32 0.25, %v367_v25 }
 0x129   :  { %v608_v40 = vmul.f32 0.25, %v409_v60  ;;  %v614_v47 = vmul.f32 0.25, %v451_v17  ;;  %v1425_v1 = vsel %vm1390_vm1, %v596_v55, %v590_v54  ;;  %v1666_v21 = vlaneseq  ;;  %v1664_v17 = vld [vmem:[%s4671_s7] sm:$0x7] }
 0x12a   :  { %v493_v44 = vadd.f32 %v492_v19, %v491_v26  ;;  %v535_v32 = vadd.f32 %v534_v50, %v533_v62  ;;  %v577_v33 = vadd.f32 %v576_v14, %v575_v29  ;;  %v1426_v43 = vsel %vm1392_vm2, %v602_v42, %v1425_v1  ;;  %v2115_v55 = vld [vmem:[%s4670_s6] ss:$0 sm:$0xff] }
 0x12b   :  { %v1427_v48 = vsel %vm1394_vm3, %v608_v40, %v1426_v43  ;;  %v1667_v52 = vshrl.u32 %v1666_v21, 7  ;;  %v3140_v43 = vmov 1   ;;  %v1765_v21 = vld [vmem:[%s4673_s9 + $0x30] sm:$0xff] }
 0x12c   :  { %v620_v59 = vmul.f32 0.25, %v493_v44  ;;  %v626_v6 = vmul.f32 0.25, %v535_v32  ;;  %v632_v7 = vmul.f32 0.25, %v577_v33  ;;  %v1428_v12 = vsel %vm1396_vm4, %v614_v47, %v1427_v48  ;;  %2938 = vset.pattern.permute.xlu0 %v3140_v43  ;;  %v1775_v48 = vld [vmem:[%s4673_s9 + $0x80] sm:$0xff]  ;;  %v1800_v43 = vld [vmem:[%s4673_s9 + $0x148] sm:$0xff] }
 0x12d   :  { %v1702_v29 = vsub.s32 2, %v1667_v52  ;;  %v1668_v60 = vsub.s32 0, %v1667_v52  ;;  %v1688_v42 = vsub.s32 1, %v1667_v52  ;;  %v3139_v33 = vmov 0  }
 0x12e   :  { %v1429_v53 = vsel %vm1398_vm5, %v620_v59, %v1428_v12  ;;  %2937 = vset.pattern.permute.xlu1 %v3139_v33  ;;  %v1776_v59 = vld [vmem:[%s4673_s9 + $0x88] sm:$0xff] }
 0x12f   :  { %v1430_v5 = vsel %vm1400_vm6, %v626_v6, %v1429_v53  ;;  %v1703_v50 = vrot.slane %v1664_v17, %v1702_v29  ;;  %v1669_v14 = vrot.slane %v1664_v17, %v1668_v60  ;;  %v1689_v44 = vrot.slane %v1664_v17, %v1688_v42  ;;  %v1759_v6 = vld [vmem:[%s4673_s9] sm:$0xff]  ;;  %v1760_v12 = vld [vmem:[%s4673_s9 + $0x8] sm:$0xff]  ;;  %v1814_v29 = vld [vmem:[%s4673_s9 + $0x1b8] sm:$0xff] }
 0x130   :  { %v4301_v13 = vsel %vm1402_vm7, %v632_v7, %v1430_v5  ;;  %v2829_v7 = vpack.c.bf16 %v1776_v59, %v1775_v48  ;;  %v1807_v53 = vld [vmem:[%s4673_s9 + $0x180] sm:$0xff]  ;;  %v1808_v5 = vld [vmem:[%s4673_s9 + $0x188] sm:$0xff]  ;;  %v1797_v17 = vld [vmem:[%s4673_s9 + $0x130] sm:$0xff] }
 0x131   :  { %1650 = vmatmul.mubr.f32.vlgmr.msra.gmra.mrb[8].mxu0 %v4301_v13  ;;  %v1816_v42 = vld [vmem:[%s4673_s9 + $0x1c8] sm:$0xff]  ;;  %v1785_v48 = vld [vmem:[%s4673_s9 + $0xd0] sm:$0xff]  ;;  %v1786_v59 = vld [vmem:[%s4673_s9 + $0xd8] sm:$0xff] }
 0x132   :  { %2830 = vmatprep.subr.bf16.mxu1 %v2829_v7  ;;  %v1818_v7 = vld [vmem:[%s4673_s9 + $0x1d8] sm:$0xff] }
 0x141   :  { %v2153_v20 = vpop.f32.mrb[0].mxu0 }
 0x142   :  { %v2188_v41 = vpop.f32.mrb[0].mxu1  ;;  %v2154_v34 = vpop.f32.mrb[1].mxu0 }
 0x143   :  { %v2155_v63 = vadd.f32 %v2154_v34, %v2153_v20  ;;  %v2189_v61 = vpop.f32.mrb[1].mxu1  ;;  %v2831_v20 = vpack.c.bf16 %v1760_v12, %v1759_v6  ;;  %v1791_v34 = vld [vmem:[%s4673_s9 + $0x100] sm:$0xff]  ;;  %v1817_v6 = vld [vmem:[%s4673_s9 + $0x1d0] sm:$0xff] }
 0x144   :  { %v2190_v28 = vadd.f32 %v2189_v61, %v2188_v41  ;;  %v2861_v41 = vpack.c.bf16 %v1808_v5, %v1807_v53  ;;  %v1777_v61 = vld [vmem:[%s4673_s9 + $0x90] sm:$0xff]  ;;  %v2849_v5 = vpack.c.bf16 %v1786_v59, %v1785_v48  ;;  %v1839_v48 = vld [vmem:[%s4673_s9 + $0x280] sm:$0xff]  ;;  %v1840_v59 = vld [vmem:[%s4673_s9 + $0x288] sm:$0xff] }
 0x145   :  { %2832 = vmatpush3.bf16.msra.mxu1 %v2831_v20  ;;  %v1769_v20 = vld [vmem:[%s4673_s9 + $0x50] sm:$0xff] }
 0x146   :  { %v963_v24 = vadd.f32 %v2190_v28, %v2155_v63  ;;  %v1792_v63 = vld [vmem:[%s4673_s9 + $0x108] sm:$0xff]  ;;  %2862 = vmatprep.subr.bf16.mxu0 %v2861_v41  ;;  %v1770_v41 = vld [vmem:[%s4673_s9 + $0x58] sm:$0xff] }
 0x147   :  { %v2863_v28 = vpack.c.bf16 %v1792_v63, %v1791_v34  ;;  %v2881_v34 = vpack.c.bf16 %v1818_v7, %v1817_v6  ;;  %v2851_v63 = vpack.c.bf16 %v1770_v41, %v1769_v20  ;;  %v2893_v6 = vpack.c.bf16 %v1840_v59, %v1839_v48  ;;  %v3002_v20 = vld [vmem:[#allocation2] sm:$0xff] }
 0x149   :  { %2864 = vmatpush3.bf16.msra.mxu0 %v2863_v28 }
 0x161   :  { %v2223_v56 = vpop.f32.mrb[2].mxu0 }
 0x162   :  { %v2224_v57 = vpop.f32.mrb[3].mxu0  ;;  %v2258_v0 = vpop.f32.mrb[2].mxu1 }
 0x163   :  { %v2225_v22 = vadd.f32 %v2224_v57, %v2223_v56  ;;  %v2259_v3 = vpop.f32.mrb[3].mxu1  ;;  %v1761_v56 = vld [vmem:[%s4673_s9 + $0x10] sm:$0xff]  ;;  %v1762_v57 = vld [vmem:[%s4673_s9 + $0x18] sm:$0xff] }
 0x164   :  { %v2260_v51 = vadd.f32 %v2259_v3, %v2258_v0  ;;  %v1809_v3 = vld [vmem:[%s4673_s9 + $0x190] sm:$0xff] }
 0x165   :  { %v1033_v35 = vadd.f32 %v2225_v22, %v963_v24  ;;  %v1778_v24 = vld [vmem:[%s4673_s9 + $0x98] sm:$0xff]  ;;  %v2835_v22 = vpack.c.bf16 %v1762_v57, %v1761_v56 }
 0x166   :  { %v2833_v0 = vpack.c.bf16 %v1778_v24, %v1777_v61  ;;  %v2116_v61 = vld [vmem:[%s4672_s8] ss:$0 sm:$0xff] }
 0x167   :  { %v1103_v2 = vadd.f32 %v2260_v51, %v1033_v35  ;;  %v1810_v51 = vld [vmem:[%s4673_s9 + $0x198] sm:$0xff]  ;;  %v1793_v35 = vld [vmem:[%s4673_s9 + $0x110] sm:$0xff] }
 0x168   :  { %2834 = vmatprep.subr.bf16.mxu1 %v2833_v0 }
 0x169   :  { %2836 = vmatpush3.bf16.msra.mxu1 %v2835_v22 }
 0x187   :  { %v2293_v23 = vpop.f32.mrb[4].mxu0 }
 0x188   :  { %v2294_v18 = vpop.f32.mrb[5].mxu0  ;;  %v2328_v36 = vpop.f32.mrb[4].mxu1 }
 0x189   :  { %v2295_v9 = vadd.f32 %v2294_v18, %v2293_v23  ;;  %v2329_v58 = vpop.f32.mrb[5].mxu1  ;;  %v1794_v23 = vld [vmem:[%s4673_s9 + $0x118] sm:$0xff]  ;;  %v1779_v18 = vld [vmem:[%s4673_s9 + $0xa0] sm:$0xff] }
 0x18a   :  { %v2330_v31 = vadd.f32 %v2329_v58, %v2328_v36  ;;  %v1780_v36 = vld [vmem:[%s4673_s9 + $0xa8] sm:$0xff] }
 0x18b   :  { %v1173_v15 = vadd.f32 %v2295_v9, %v1103_v2  ;;  %v2865_v2 = vpack.c.bf16 %v1810_v51, %v1809_v3  ;;  %v2867_v9 = vpack.c.bf16 %v1794_v23, %v1793_v35  ;;  %v2837_v58 = vpack.c.bf16 %v1780_v36, %v1779_v18 }
 0x18d   :  { %v1243_v38 = vadd.f32 %v2330_v31, %v1173_v15  ;;  %v1763_v31 = vld [vmem:[%s4673_s9 + $0x20] sm:$0xff]  ;;  %v1764_v15 = vld [vmem:[%s4673_s9 + $0x28] sm:$0xff]  ;;  %2866 = vmatprep.subr.bf16.mxu0 %v2865_v2  ;;  %2838 = vmatprep.subr.bf16.mxu1 %v2837_v58 }
 0x18e   :  { %2868 = vmatpush3.bf16.msra.mxu0 %v2867_v9 }
 0x1c5   :  { %v2363_v39 = vpop.f32.mrb[6].mxu0 }
 0x1c6   :  { %v2364_v4 = vpop.f32.mrb[7].mxu0 }
 0x1c7   :  { %v2365_v8 = vadd.f32 %v2364_v4, %v2363_v39  ;;  %v1812_v39 = vld [vmem:[%s4673_s9 + $0x1a8] sm:$0xff]  ;;  %v1795_v4 = vld [vmem:[%s4673_s9 + $0x120] sm:$0xff] }
 0x1d9   :  { %v2398_v10 = vpop.f32.mrb[6].mxu1 }
 0x1da   :  { %v2399_v11 = vpop.f32.mrb[7].mxu1 }
 0x1db   :  { %v2400_v30 = vadd.f32 %v2399_v11, %v2398_v10  ;;  %v2839_v10 = vpack.c.bf16 %v1764_v15, %v1763_v31  ;;  %v1801_v31 = vld [vmem:[%s4673_s9 + $0x150] sm:$0xff]  ;;  %v1802_v15 = vld [vmem:[%s4673_s9 + $0x158] sm:$0xff] }
 0x1dd   :  { %v1582_v45 = vadd.f32 %v2400_v30, %v2365_v8  ;;  %v1796_v8 = vld [vmem:[%s4673_s9 + $0x128] sm:$0xff]  ;;  %v1781_v30 = vld [vmem:[%s4673_s9 + $0xb0] sm:$0xff]  ;;  %2840 = vmatpush3.bf16.msra.mxu1 %v2839_v10  ;;  %v1771_v10 = vld [vmem:[%s4673_s9 + $0x60] sm:$0xff] }
 0x1de   :  { %v2871_v52 = vpack.c.bf16 %v1796_v8, %v1795_v4  ;;  %v1787_v4 = vld [vmem:[%s4673_s9 + $0xe0] sm:$0xff]  ;;  %v1788_v8 = vld [vmem:[%s4673_s9 + $0xe8] sm:$0xff] }
 0x204   :  { %v2433_v25 = vpop.f32.mrb[8].mxu0 }
 0x205   :  { %v2434_v26 = vpop.f32.mrb[9].mxu0 }
 0x206   :  { %v2435_v62 = vadd.f32 %v2434_v26, %v2433_v25  ;;  %v1766_v26 = vld [vmem:[%s4673_s9 + $0x38] sm:$0xff] }
 0x208   :  { %v1652_v54 = vadd.f32 %v2435_v62, %v1582_v45  ;;  %v1782_v45 = vld [vmem:[%s4673_s9 + $0xb8] sm:$0xff]  ;;  %v1813_v62 = vld [vmem:[%s4673_s9 + $0x1b0] sm:$0xff] }
 0x209   :  { %v2841_v25 = vpack.c.bf16 %v1782_v45, %v1781_v30  ;;  %v2873_v60 = vpack.c.bf16 %v1814_v29, %v1813_v62  ;;  %v1772_v30 = vld [vmem:[%s4673_s9 + $0x68] sm:$0xff]  ;;  %v1819_v45 = vld [vmem:[%s4673_s9 + $0x1e0] sm:$0xff] }
 0x20a   :  { %v1655_v19 = vadd.f32 %v1652_v54, %v1243_v38  ;;  %v1811_v38 = vld [vmem:[%s4673_s9 + $0x1a0] sm:$0xff]  ;;  %v1798_v54 = vld [vmem:[%s4673_s9 + $0x138] sm:$0xff]  ;;  %v1804_v62 = vld [vmem:[%s4673_s9 + $0x168] sm:$0xff] }
 0x20b   :  { %v2869_v11 = vpack.c.bf16 %v1812_v39, %v1811_v38  ;;  %2842 = vmatprep.subr.bf16.mxu1 %v2841_v25  ;;  %v2883_v38 = vpack.c.bf16 %v1802_v15, %v1801_v31  ;;  %v1823_v31 = vld [vmem:[%s4673_s9 + $0x200] sm:$0xff]  ;;  %v1824_v15 = vld [vmem:[%s4673_s9 + $0x208] sm:$0xff] }
 0x20c   :  { %v1663_v40 = vadd.f32 %v2115_v55, %v1655_v19  ;;  %v1783_v55 = vld [vmem:[%s4673_s9 + $0xc0] sm:$0xff]  ;;  %v1784_v19 = vld [vmem:[%s4673_s9 + $0xc8] sm:$0xff] }
 0x20d   :  { %2870 = vmatprep.subr.bf16.mxu0 %v2869_v11  ;;  %v2853_v11 = vpack.c.bf16 %v1788_v8, %v1787_v4 }
 0x20e   :  { %v1704_v47 = vmul.f32 %v1703_v50, %v1663_v40  ;;  %v1670_v1 = vmul.f32 %v1669_v14, %v1663_v40  ;;  %v1690_v32 = vmul.f32 %v1689_v44, %v1663_v40  ;;  %v2843_v50 = vpack.c.bf16 %v1766_v26, %v1765_v21  ;;  %v1815_v14 = vld [vmem:[%s4673_s9 + $0x1c0] sm:$0xff]  ;;  %2872 = vmatpush3.bf16.msra.mxu0 %v2871_v52  ;;  %v1768_v44 = vld [vmem:[%s4673_s9 + $0x48] sm:$0xff] }
 0x20f   :  { %v2875_v40 = vpack.c.bf16 %v1798_v54, %v1797_v17  ;;  %2874 = vmatprep.subr.bf16.mxu0 %v2873_v60  ;;  %v2877_v33 = vpack.c.bf16 %v1816_v42, %v1815_v14  ;;  %v1820_v21 = vld [vmem:[%s4673_s9 + $0x1e8] sm:$0xff]  ;;  %v2855_v52 = vpack.c.bf16 %v1772_v30, %v1771_v10  ;;  %v1803_v26 = vld [vmem:[%s4673_s9 + $0x160] sm:$0xff]  ;;  %v1789_v17 = vld [vmem:[%s4673_s9 + $0xf0] sm:$0xff] }
 0x210   :  { %1705 = vadd.xlane.f32.xlu1 %v1704_v47  ;;  %1671 = vadd.xlane.f32.xlu0 %v1670_v1  ;;  %v2845_v47 = vpack.c.bf16 %v1784_v19, %v1783_v55  ;;  %v1767_v1 = vld [vmem:[%s4673_s9 + $0x40] sm:$0xff]  ;;  %v2885_v25 = vpack.c.bf16 %v1820_v21, %v1819_v45  ;;  %v2887_v60 = vpack.c.bf16 %v1804_v62, %v1803_v26  ;;  %v1790_v54 = vld [vmem:[%s4673_s9 + $0xf8] sm:$0xff]  ;;  %v3141_v19 = vmov 2   ;;  %v1773_v14 = vld [vmem:[%s4673_s9 + $0x70] sm:$0xff] }
 0x211   :  { %2844 = vmatpush3.bf16.msra.mxu1 %v2843_v50  ;;  %v2847_v12 = vpack.c.bf16 %v1768_v44, %v1767_v1  ;;  %v2857_v50 = vpack.c.bf16 %v1790_v54, %v1789_v17  ;;  %v1774_v42 = vld [vmem:[%s4673_s9 + $0x78] sm:$0xff]  ;;  %v1805_v44 = vld [vmem:[%s4673_s9 + $0x170] sm:$0xff]  ;;  %v2895_v26 = vpack.c.bf16 %v1824_v15, %v1823_v31  ;;  %v1844_v54 = vld [vmem:[%s4673_s9 + $0x2a8] sm:$0xff] }
 0x212   :  { %2876 = vmatpush3.bf16.msra.mxu0 %v2875_v40  ;;  %2846 = vmatprep.subr.bf16.mxu1 %v2845_v47  ;;  %v1821_v40 = vld [vmem:[%s4673_s9 + $0x1f0] sm:$0xff]  ;;  %v2859_v47 = vpack.c.bf16 %v1774_v42, %v1773_v14  ;;  %v1822_v1 = vld [vmem:[%s4673_s9 + $0x1f8] sm:$0xff]  ;;  %v1828_v14 = vld [vmem:[%s4673_s9 + $0x228] sm:$0xff] }
 0x213   :  { %2878 = vmatprep.subr.bf16.mxu0 %v2877_v33  ;;  %v2889_v33 = vpack.c.bf16 %v1822_v1, %v1821_v40  ;;  %v1841_v10 = vld [vmem:[%s4673_s9 + $0x290] sm:$0xff]  ;;  %v1846_v40 = vld [vmem:[%s4673_s9 + $0x2b8] sm:$0xff]  ;;  %v3012_v31 = vld [vmem:[%s4664_s0 + $0x20] sm:$0xff] }
 0x214   :  { %1691 = vadd.xlane.f32.xlu0 %v1690_v32  ;;  %v1799_v32 = vld [vmem:[%s4673_s9 + $0x140] sm:$0xff]  ;;  %v1845_v42 = vld [vmem:[%s4673_s9 + $0x2b0] sm:$0xff] }
 0x215   :  { %v2879_v53 = vpack.c.bf16 %v1800_v43, %v1799_v32  ;;  %2848 = vmatpush3.bf16.msra.mxu1 %v2847_v12  ;;  %v1806_v32 = vld [vmem:[%s4673_s9 + $0x178] sm:$0xff]  ;;  %v2905_v1 = vpack.c.bf16 %v1846_v40, %v1845_v42 }
 0x216   :  { %2850 = vmatprep.subr.bf16.mxu1 %v2849_v5  ;;  %v2891_v43 = vpack.c.bf16 %v1806_v32, %v1805_v44  ;;  %v1829_v44 = vld [vmem:[%s4673_s9 + $0x230] sm:$0xff]  ;;  %v1830_v32 = vld [vmem:[%s4673_s9 + $0x238] sm:$0xff] }
 0x217   :  { %2880 = vmatpush3.bf16.msra.mxu0 %v2879_v53  ;;  %v3001_v53 = vld [vmem:[%s4664_s0 + $0x8] sm:$0xff]  ;;  %v2907_v48 = vpack.c.bf16 %v1830_v32, %v1829_v44 }
 0x218   :  { %2882 = vmatprep.subr.bf16.mxu0 %v2881_v34  ;;  %v3003_v34 = vld [vmem:[#allocation2 + $0x10] sm:$0xff] }
 0x219   :  { %2852 = vmatpush3.bf16.msra.mxu1 %v2851_v63 }
 0x21a   :  { %2854 = vmatprep.subr.bf16.mxu1 %v2853_v11  ;;  %v1842_v11 = vld [vmem:[%s4673_s9 + $0x298] sm:$0xff] }
 0x21b   :  { %2884 = vmatpush3.bf16.msra.mxu0 %v2883_v38  ;;  %v3010_v38 = vld [vmem:[%s4664_s0 + $0x28] sm:$0xff] }
 0x21c   :  { %2886 = vmatprep.subr.bf16.mxu0 %v2885_v25 }
 0x21d   :  { %2856 = vmatpush3.bf16.msra.mxu1 %v2855_v52 }
 0x21e   :  { %2858 = vmatprep.subr.bf16.mxu1 %v2857_v50  ;;  %v1827_v50 = vld [vmem:[%s4673_s9 + $0x220] sm:$0xff] }
 0x21f   :  { %2888 = vmatpush3.bf16.msra.mxu0 %v2887_v60  ;;  %v1826_v60 = vld [vmem:[%s4673_s9 + $0x218] sm:$0xff] }
 0x220   :  { %2890 = vmatprep.subr.bf16.mxu0 %v2889_v33  ;;  %v1847_v33 = vld [vmem:[%s4673_s9 + $0x2c0] sm:$0xff] }
 0x221   :  { %2860 = vmatpush3.bf16.msra.mxu1 %v2859_v47  ;;  %v2903_v47 = vpack.c.bf16 %v1828_v14, %v1827_v50 }
 0x222   :  { %2894 = vmatprep.subr.bf16.mxu1 %v2893_v6  ;;  %v1831_v6 = vld [vmem:[%s4673_s9 + $0x240] sm:$0xff] }
 0x223   :  { %2892 = vmatpush3.bf16.msra.mxu0 %v2891_v43  ;;  %v1848_v43 = vld [vmem:[%s4673_s9 + $0x2c8] sm:$0xff] }
 0x224   :  { %v2909_v59 = vpack.c.bf16 %v1848_v43, %v1847_v33 }
 0x29d   :  { %v1706_v28 = vpop.xlane.xlu1 %1705  ;;  %v1672_v24 = vpop.xlane.xlu0 %1671 }
 0x29e   :  { %v1707_v56 = vadd.f32 %v2116_v61, %v1706_v28  ;;  %v1679_v57 = vadd.f32 %v2116_v61, %v1672_v24  ;;  %v3005_v24 = vld [vmem:[%s4664_s0 + $0x18] sm:$0xff] }
 0x2a0   :  { %v2119_v0 = vmul.f32 -1.442695, %v1707_v56  ;;  %v2117_v22 = vmul.f32 -1.442695, %v1679_v57 }
 0x2a1   :  { %v1692_v3 = vpop.xlane.xlu0 %1691 }
 0x2a2   :  { %v1693_v51 = vadd.f32 %v2116_v61, %v1692_v3  ;;  %2989 = vpow2.f32 %v2117_v22  ;;  %v3004_v61 = vld [vmem:[#allocation2 + $0x8] sm:$0xff]  ;;  %v3007_v3 = vld [vmem:[%s4664_s0] sm:$0xff] }
 0x2a3   :  { %2991 = vpow2.f32 %v2119_v0  ;;  %v3006_v0 = vld [vmem:[#allocation2 + $0x18] sm:$0xff] }
 0x2a4   :  { %v2118_v35 = vmul.f32 -1.442695, %v1693_v51 }
 0x2a6   :  { %2993 = vpow2.f32 %v2118_v35  ;;  %v3008_v35 = vld [vmem:[%s4664_s0 + $0x10] sm:$0xff]  ;;  %s3142_s0 = smov [#allocation10]  }
 0x2a7   :  { %s2080_s18 = sshll.u32 %s3142_s0, 4  ;;  %s2081_s18 = int_to_ptr.vmem [resolvable:$true] %s2080_s18 }
 0x2a8   :  { %s3101_s24 = scalar_lea.vmem %s2081_s18, 128  ;;  %p3106_p5 = scmp.lt.s32.totalorder %s2081_s18, %s2081_s18 }
 0x2a9   :  { %p3102_p4 = scmp.ne.s32.totalorder %s2081_s18, %s3101_s24  ;;  %p3107_p6 = scmp.lt.s32.totalorder %s3101_s24, %s3101_s24 }
 0x2ab   :  { %p3108_p7 = por %p3107_p6, %p3106_p5 }
 0x2ac   :  { %v2990_v2 = vpop.eup %2989 }
 0x2ad   :  { %v2992_v23 = vpop.eup %2991  ;;  %v1683_v18 = vadd.f32 1.0, %v2990_v2  ;;  %p3109_p8 = pnand %p3108_p7, %p3102_p4 }
 0x2ae   :  { %v1711_v9 = vadd.f32 1.0, %v2992_v23  ;;  %v3009_v23 = vld [vmem:[#allocation2 + $0x28] sm:$0xff] }
 0x2af   :  { %2995 = vrcp.f32 %v1683_v18 }
 0x2b0   :  { %v2994_v36 = vpop.eup %2993 }
 0x2b1   :  { %v1697_v58 = vadd.f32 1.0, %v2994_v36 }
 0x2b3   :  { %2997 = vrcp.f32 %v1697_v58 }
 0x2b4   :  { %2999 = vrcp.f32 %v1711_v9 }
 0x2b9   :  { %v2996_v39 = vpop.eup %2995 }
 0x2ba   :  { %1716 = vperm.xlu1 %2937, %v2996_v39  }
 0x2bd   :  { %v2998_v29 = vpop.eup %2997 }
 0x2be   :  { %1727 = vperm.xlu0 %2938, %v2998_v29   ;;  %v3000_v55 = vpop.eup %2999  ;;  %2939 = vset.pattern.permute.xlu1 %v3141_v19  ;;  %v1825_v29 = vld [vmem:[%s4673_s9 + $0x210] sm:$0xff] }
 0x2bf   :  { %1744 = vperm.xlu1 %2939, %v3000_v55   ;;  %v2899_v55 = vpack.c.bf16 %v1826_v60, %v1825_v29 }
 0x2c2   :  { %2940 = vset.pattern.permute.xlu0 %v3141_v19 }
 0x339   :  { %v4511_v7 = vpop.permute.xlu1 %1716 }
 0x33a   :  { %v1720_v5 = vmul.f32 %v3001_v53, %v4511_v7  ;;  %v1722_v56 = vmul.f32 %v3005_v24, %v4511_v7  ;;  %v1719_v51 = vmul.f32 %v3007_v3, %v4511_v7  ;;  %v1721_v2 = vmul.f32 %v3008_v35, %v4511_v7  ;;  %v1832_v53 = vld [vmem:[%s4673_s9 + $0x248] sm:$0xff]  ;;  %v1854_v35 = vld [vmem:[%s4673_s9 + $0x2f8] sm:$0xff] }
 0x33b   :  { %v1724_v39 = vmul.f32 %v3010_v38, %v4511_v7  ;;  %v1852_v24 = vld [vmem:[%s4673_s9 + $0x2e8] sm:$0xff]  ;;  %v1723_v15 = vmul.f32 %v3012_v31, %v4511_v7 }
 0x33c   :  { %v1836_v3 = vld [vmem:[%s4673_s9 + $0x268] sm:$0xff] }
 0x33d   :  { %v4513_v12 = vpop.permute.xlu0 %1727 }
 0x33e   :  { %v1730_v41 = vmul.f32 %v3002_v20, %v4513_v12  ;;  %v1732_v63 = vmul.f32 %v3003_v34, %v4513_v12  ;;  %v1731_v28 = vmul.f32 %v3004_v61, %v4513_v12  ;;  %v4526_v57 = vpop.permute.xlu1 %1744  ;;  %v1733_v22 = vmul.f32 %v3006_v0, %v4513_v12  ;;  %v1850_v20 = vld [vmem:[%s4673_s9 + $0x2d8] sm:$0xff] }
 0x33f   :  { %v1735_v18 = vmul.f32 %v3009_v23, %v4513_v12  ;;  %v1747_v36 = vmul.f32 %v4526_v57, %v4120_v27  ;;  %v1749_v9 = vmul.f32 %v4526_v57, %v4220_v46  ;;  %v1748_v27 = vmul.f32 %v4526_v57, %v4023_v37  ;;  %v1834_v61 = vld [vmem:[%s4673_s9 + $0x258] sm:$0xff]  ;;  %v3011_v23 = vld [vmem:[#allocation2 + $0x20] sm:$0xff] }
 0x340   :  { %v1737_v58 = vadd.f32 %v1731_v28, %v1720_v5  ;;  %v1739_v4 = vadd.f32 %v1733_v22, %v1722_v56  ;;  %v1750_v46 = vmul.f32 %v4526_v57, %v4093_v49  ;;  %v1736_v8 = vadd.f32 %v1730_v41, %v1719_v51  ;;  %v1849_v5 = vld [vmem:[%s4673_s9 + $0x2d0] sm:$0xff]  ;;  %v1851_v28 = vld [vmem:[%s4673_s9 + $0x2e0] sm:$0xff] }
 0x341   :  { %v1738_v30 = vadd.f32 %v1732_v63, %v1721_v2  ;;  %v1741_v45 = vadd.f32 %v1735_v18, %v1724_v39  ;;  %v1752_v21 = vmul.f32 %v4526_v57, %v4286_v16  ;;  %v2897_v49 = vpack.c.bf16 %v1842_v11, %v1841_v10  ;;  %v1843_v16 = vld [vmem:[%s4673_s9 + $0x2a0] sm:$0xff]  ;;  %v1833_v63 = vld [vmem:[%s4673_s9 + $0x250] sm:$0xff] }
 0x342   :  { %v1754_v52 = vadd.f32 %v1748_v27, %v1737_v58  ;;  %v1756_v37 = vadd.f32 %v1750_v46, %v1739_v4  ;;  %v1753_v25 = vadd.f32 %v1747_v36, %v1736_v8  ;;  %v2901_v19 = vpack.c.bf16 %v1844_v54, %v1843_v16  ;;  %v1835_v22 = vld [vmem:[%s4673_s9 + $0x260] sm:$0xff]  ;;  %v1853_v51 = vld [vmem:[%s4673_s9 + $0x2f0] sm:$0xff]  ;;  %v1838_v58 = vld [vmem:[%s4673_s9 + $0x278] sm:$0xff] }
 0x343   :  { %v1755_v62 = vadd.f32 %v1749_v9, %v1738_v30  ;;  %v1758_v17 = vadd.f32 %v1752_v21, %v1741_v45  ;;  %v2911_v41 = vpack.c.bf16 %v1832_v53, %v1831_v6  ;;  %v2913_v34 = vpack.c.bf16 %v1850_v20, %v1849_v5  ;;  %v1837_v9 = vld [vmem:[%s4673_s9 + $0x270] sm:$0xff]  ;;  %v2120_v8 = vld [vmem:[%s4674_s10] ss:$0 sm:$0xff] }
 0x344   :  { %1926 = vmatprep.mubr.f32.mxu1 %v1754_v52  ;;  %1996 = vmatprep.mubr.f32.mxu0 %v1756_v37  ;;  %v2915_v56 = vpack.c.bf16 %v1834_v61, %v1833_v63  ;;  %v2917_v0 = vpack.c.bf16 %v1852_v24, %v1851_v28  ;;  %v2919_v2 = vpack.c.bf16 %v1836_v3, %v1835_v22 }
 0x345   :  { %1927 = vmatmul.mubr.f32.vlgmr.msra.gmra.mrb[8].mxu1 %v1753_v25  ;;  %1997 = vmatmul.mubr.f32.vlgmr.msra.gmra.mrb[10].mxu0 %v1755_v62  ;;  %v1734_v18 = vmul.f32 %v3011_v23, %v4513_v12  ;;  %v2921_v36 = vpack.c.bf16 %v1854_v35, %v1853_v51  ;;  %v2923_v38 = vpack.c.bf16 %v1838_v58, %v1837_v9 }
 0x346   :  { %2896 = vmatpush3.bf16.msra.mxu1 %v2895_v26  ;;  %2066 = vmatprep.mubr.f32.mxu1 %v1758_v17  ;;  %v1751_v12 = vmul.f32 %v4526_v57, %v4301_v13 }
 0x347   :  { %2898 = vmatprep.subr.bf16.mxu1 %v2897_v49  ;;  %v1740_v39 = vadd.f32 %v1734_v18, %v1723_v15 }
 0x349   :  { %v1757_v27 = vadd.f32 %v1751_v12, %v1740_v39 }
 0x34a   :  { %2900 = vmatpush3.bf16.msra.mxu1 %v2899_v55 }
 0x34b   :  { %2902 = vmatprep.subr.bf16.mxu1 %v2901_v19 }
 0x34e   :  { %2904 = vmatpush3.bf16.msra.mxu1 %v2903_v47 }
 0x34f   :  { %2906 = vmatprep.subr.bf16.mxu1 %v2905_v1 }
 0x352   :  { %2908 = vmatpush3.bf16.msra.mxu1 %v2907_v48 }
 0x353   :  { %2910 = vmatprep.subr.bf16.mxu1 %v2909_v59 }
 0x356   :  { %2912 = vmatpush3.bf16.msra.mxu1 %v2911_v41 }
 0x357   :  { %2914 = vmatprep.subr.bf16.mxu1 %v2913_v34 }
 0x35a   :  { %2916 = vmatpush3.bf16.msra.mxu1 %v2915_v56 }
 0x35b   :  { %2918 = vmatprep.subr.bf16.mxu1 %v2917_v0 }
 0x35e   :  { %2920 = vmatpush3.bf16.msra.mxu1 %v2919_v2 }
 0x35f   :  { %2922 = vmatprep.subr.bf16.mxu1 %v2921_v36 }
 0x362   :  { %2924 = vmatpush3.bf16.msra.mxu1 %v2923_v38 }
 0x365   :  { %2067 = vmatmul.mubr.f32.vlgmr.msra.gmra.mrb[10].mxu1 %v1757_v27 }
 0x418   :  { %v2468_v4 = vpop.f32.mrb[8].mxu1  ;;  %v2503_v46 = vpop.f32.mrb[10].mxu0 }
 0x419   :  { %v2469_v10 = vpop.f32.mrb[9].mxu1  ;;  %v2504_v11 = vpop.f32.mrb[11].mxu0 }
 0x41a   :  { %v2470_v30 = vadd.f32 %v2469_v10, %v2468_v4  ;;  %v2505_v7 = vadd.f32 %v2504_v11, %v2503_v46 }
 0x41c   :  { %v1929_v45 = vadd.f32 %v2470_v30, %v2120_v8 }
 0x41e   :  { %v1999_v21 = vadd.f32 %v2505_v7, %v1929_v45 }
 0x438   :  { %v2538_v52 = vpop.f32.mrb[10].mxu1 }
 0x439   :  { %v2539_v37 = vpop.f32.mrb[11].mxu1 }
 0x43a   :  { %v2540_v13 = vadd.f32 %v2539_v37, %v2538_v52 }
 0x43c   :  { %v2069_v57 = vadd.f32 %v2540_v13, %v1999_v21 }
 0x43e   :  { %2073 = vst.msk [vmem:[#allocation10] sm:$0xff] %vm2072_vm8, %v2069_v57 }
 0x43f   :  { %3112 = shalt.err (!%p3109_p8)
}
 0x440   :  { %s3113_s26 = scalar_lea.hbm %s4675_s11, 128 }
 0x441   :  { %p3114_p9 = scmp.ne.s32.totalorder %s4675_s11, %s3113_s26  ;;  %p3117_p10 = scmp.lt.u32.totalorder %s3113_s26, %s4675_s11 }
 0x443   :  { %p3119_p11 = pnand %p3117_p10, %p3114_p9 }
 0x445   :  { %3122 = shalt.err (!%p3119_p11)
}
 0x446   :  { %2083 = dma.vmem_to_hbm [thread:$0]  %s2081_s18, 128, %s4675_s11, [#allocation4]  }
 0x447   :  { %3129 = dma.done.wait [#allocation4], 128  }
 0x448   :  { %3130 = vsyncadd [#allocation4], 4294967168 }
 0x449   :  { %2087 = vsyncpa [#allocation3], 1 }
 0x44a   :  { %2088 = vsyncpa [#allocation6], 1 }
 0x44b   :  { %2089 = vsyncpa [#allocation9], 1 }
 0x44c   :  { %2090 = vsyncpa [#allocation4], 1 }

</bundles_post_ra>
